<compile_context>
chip_gen: v5e
topology: v5e:2x2
jax: 0.10.0
libtpu: 0.0.40
codegen_flags: <defaults>
</compile_context>

<pallas_src>
import functools

import jax
import jax.numpy as jnp
import numpy as np
from jax.experimental import pallas as pl
from jax.experimental.pallas import tpu as pltpu


def _patch_embed_kernel(bb, Np, N, P, E,
                        xv0_ref, x2_ref,
                        w1_ref, w2_ref, w3_ref,
                        b1_ref, b2_ref, b3_ref,
                        out_ref,
                        y0s_ref, y2s_ref):
    M0 = bb * Np * N      # rows of y0 / y1
    M2 = bb * Np * Np     # rows of y2 / out

    # conv1 (1xP, stride 1xP): rows (b, wp, k) -> y0[(b,wp,k), e] == y0_torch[b, e, k, wp]
    y0 = jnp.dot(xv0_ref[...], w1_ref[...],
                 preferred_element_type=jnp.float32) + b1_ref[...]
    # conv2 (Px1, stride Px1): rows (b, hq, k) -> y1[(b,hq,k), e] == y1_torch[b, e, hq, k]
    y1 = jnp.dot(x2_ref[...], w2_ref[...],
                 preferred_element_type=jnp.float32) + b2_ref[...]

    # Stash y0 in VMEM so it can be re-read with strided row slices over k = hq*P + p.
    # (All reshapes below only split/merge row groups that are multiples of the
    #  8-sublane tile, so they are layout-free.)
    y0s_ref[...] = y0.reshape(bb, Np * N, E)

    # ---- y2 = conv3(y0), derived in-kernel from y0 (no extra HBM stream) ----
    # y2[(b,wp,hq), f] = b3[f] + sum_{p,e} w3[f,e,p] * y0[(b, wp, hq*P+p), e]
    # Strided read at stride P picks out rows k = p, P+p, ... which are exactly
    # the (wp, hq) plane in row-major order.
    acc = jnp.zeros((M2, E), jnp.float32)
    for p in range(P):
        y0_p = y0s_ref[:, pl.ds(p, Np * Np, stride=P), :].reshape(M2, E)
        acc = acc + jnp.dot(y0_p, w3_ref[p],
                            preferred_element_type=jnp.float32)
    y2s_ref[...] = (acc + b3_ref[...]).reshape(bb, Np * Np, E)   # [b, (wp,hq), f]

    # ---- attention + output, one hq row at a time (no 5-D blow-up) ----
    y0_4 = y0.reshape(bb, Np, N, E)   # [b, wp, k, e]
    y1_4 = y1.reshape(bb, Np, N, E)   # [b, hq, k, e]
    for hq in range(Np):
        # attn[b, hq, wp, e] = sigmoid( sum_k y1[b, hq, k, e] * y0[b, wp, k, e] )
        s = jnp.sum(y1_4[:, hq][:, None, :, :] * y0_4, axis=2)    # [bb, wp, e]
        attn_hq = jax.nn.sigmoid(s)
        # y2 rows (b, wp) for this hq: strided read of the (wp, hq) plane.
        y2_hq = y2s_ref[:, pl.ds(hq, Np, stride=Np), :]           # [bb, wp, f]
        out_ref[:, hq, :, :] = (y2_hq * attn_hq).astype(out_ref.dtype)


def prepare_params(w1, b1, w2, b2, w3, b3, *, compute_dtype=None):
    """One-time weight/bias layout prep (hoisted out of the per-call wrapper).

    w1: (E, C, 1, P), w2: (E, C, P, 1), w3: (E, E, P, 1), biases: (E,).
    """
    E, C, P = w1.shape[0], w1.shape[1], w1.shape[3]
    wd = compute_dtype if compute_dtype is not None else w1.dtype
    # [(c,pc), e] / [(c,r), e] -- these multiply the big activation streams.
    w1r = jnp.transpose(w1.reshape(E, C, P), (1, 2, 0)).reshape(C * P, E).astype(wd)
    w2r = jnp.transpose(w2.reshape(E, C, P), (1, 2, 0)).reshape(C * P, E).astype(wd)
    # conv3 taps: w3s[p, e, f] = w3[f, e, p]  (kept f32: tiny and grid-invariant,
    # and it multiplies the f32 y0 accumulator).
    w3s = jnp.transpose(w3.reshape(E, E, P), (2, 1, 0)).astype(jnp.float32)
    b1r = b1.reshape(1, E).astype(jnp.float32)
    b2r = b2.reshape(1, E).astype(jnp.float32)
    b3r = b3.reshape(1, E).astype(jnp.float32)
    return (w1r, w2r, w3s, b1r, b2r, b3r)


def patch_embed_conn_v2(x, params, patch_size, *, batch_block=2,
                        compute_dtype=None, out_dtype=jnp.float32):
    """x: (B, C, N, N) NCHW; params from prepare_params().

    Returns (B, (N//P)**2, E) == torch's x.flatten(2).permute(0, 2, 1).
    compute_dtype=jnp.bfloat16 feeds bf16 operands to the MXU (f32 accumulation),
    halving activation DMA bytes -- recommended on v5e/v6e/v7x.
    """
    B, C, N, W = x.shape
    P = patch_size
    Np = N // P
    E = params[0].shape[1]
    bb = batch_block
    assert W == N and N % P == 0 and B % bb == 0
    # Layout invariants the kernel relies on (keep all in-kernel reshapes
    # layout-free: second-minor dims stay multiples of the 8-sublane tile).
    assert N % 8 == 0 and (Np * Np) % 8 == 0

    act_dtype = compute_dtype if compute_dtype is not None else x.dtype
    w1r, w2r, w3s, b1r, b2r, b3r = params
    w1r = w1r.astype(act_dtype)
    w2r = w2r.astype(act_dtype)

    # ---- per-call activation layout work (pure transposes in the XLA wrapper) ----
    # conv1 input: rows (b, wp, k), cols (c, pc):  x[b, c, k, wp*P + pc]
    xv0 = x.reshape(B, C, N, Np, P).transpose(0, 3, 2, 1, 4)
    xv0 = xv0.reshape(B * Np * N, C * P).astype(act_dtype)
    # conv2 input: rows (b, hq, k), cols (c, r):   x[b, c, hq*P + r, k]
    x2 = x.reshape(B, C, Np, P, N).transpose(0, 2, 4, 1, 3)
    x2 = x2.reshape(B * Np * N, C * P).astype(act_dtype)

    kernel = functools.partial(_patch_embed_kernel, bb, Np, N, P, E)
    out = pl.pallas_call(
        kernel,
        out_shape=jax.ShapeDtypeStruct((B, Np, Np, E), out_dtype),
        grid=(B // bb,),
        in_specs=[
            pl.BlockSpec((bb * Np * N, C * P), lambda i: (i, 0)),
            pl.BlockSpec((bb * Np * N, C * P), lambda i: (i, 0)),
            pl.BlockSpec((C * P, E), lambda i: (0, 0)),
            pl.BlockSpec((C * P, E), lambda i: (0, 0)),
            pl.BlockSpec((P, E, E), lambda i: (0, 0, 0)),
            pl.BlockSpec((1, E), lambda i: (0, 0)),
            pl.BlockSpec((1, E), lambda i: (0, 0)),
            pl.BlockSpec((1, E), lambda i: (0, 0)),
        ],
        out_specs=pl.BlockSpec((bb, Np, Np, E), lambda i: (i, 0, 0, 0)),
        scratch_shapes=[
            pltpu.VMEM((bb, Np * N, E), jnp.float32),    # y0 (re-read strided)
            pltpu.VMEM((bb, Np * Np, E), jnp.float32),   # y2 (re-read per hq)
        ],
        compiler_params=pltpu.CompilerParams(
            dimension_semantics=("parallel",)),
    )(xv0, x2, w1r, w2r, w3s, b1r, b2r, b3r)
    # (B, hq, wp, E) -> (B, num_patches, E); free reshape, matches
    # torch's x.flatten(2).permute(0, 2, 1).
    return out.reshape(B, Np * Np, E)


def _reference(x, w1, b1, w2, b2, w3, b3, patch_size):
    """Pure-JAX reference mirroring the PyTorch forward exactly (NCHW convs)."""
    P = patch_size
    prec = jax.lax.Precision.HIGHEST

    def conv(inp, w, b, stride):
        y = jax.lax.conv_general_dilated(
            inp, w, window_strides=stride, padding="VALID",
            dimension_numbers=("NCHW", "OIHW", "NCHW"), precision=prec)
        return y + b[None, :, None, None]

    y0 = conv(x, w1, b1, (1, P))                               # (B, E, N, N/P)
    y1 = conv(x, w2, b2, (P, 1))                               # (B, E, N/P, N)
    attn = jax.nn.sigmoid(jnp.matmul(y1, y0, precision=prec))  # (B, E, N/P, N/P)
    y2 = conv(y0, w3, b3, (P, 1))                              # (B, E, N/P, N/P)
    out = y2 * attn
    B, E = out.shape[0], out.shape[1]
    return out.reshape(B, E, -1).transpose(0, 2, 1)            # (B, num_patches, E)


if __name__ == "__main__":
    B, C, N, P, E = 4, 4, 16, 4, 32   # batch, in_chans, num_node, patch_size, embed_dim

    key = jax.random.PRNGKey(0)
    kx, k1, k2, k3, kb1, kb2, kb3 = jax.random.split(key, 7)
    x = jax.random.normal(kx, (B, C, N, N), dtype=jnp.float32)
    w1 = jax.random.normal(k1, (E, C, 1, P), dtype=jnp.float32) * 0.1
    w2 = jax.random.normal(k2, (E, C, P, 1), dtype=jnp.float32) * 0.1
    w3 = jax.random.normal(k3, (E, E, P, 1), dtype=jnp.float32) * 0.1
    b1 = jax.random.normal(kb1, (E,), dtype=jnp.float32) * 0.1
    b2 = jax.random.normal(kb2, (E,), dtype=jnp.float32) * 0.1
    b3 = jax.random.normal(kb3, (E,), dtype=jnp.float32) * 0.1

    # ---- f32 path: 2 images per grid step, grid=(2,) "parallel" ----
    params = prepare_params(w1, b1, w2, b2, w3, b3)
    out = jax.block_until_ready(
        patch_embed_conn_v2(x, params, P, batch_block=2))
    ref = jax.block_until_ready(_reference(x, w1, b1, w2, b2, w3, b3, P))
    np.testing.assert_allclose(np.asarray(out), np.asarray(ref),
                               rtol=5e-3, atol=5e-3)

    # ---- bf16 MXU path (bf16 operands + bf16 output, f32 accumulation) ----
    rb = lambda a: a.astype(jnp.bfloat16).astype(jnp.float32)
    xb, w1b, w2b, w3b = rb(x), rb(w1), rb(w2), rb(w3)
    params_bf = prepare_params(w1b, b1, w2b, b2, w3b, b3,
                               compute_dtype=jnp.bfloat16)
    out_bf = patch_embed_conn_v2(xb, params_bf, P, batch_block=2,
                                 compute_dtype=jnp.bfloat16,
                                 out_dtype=jnp.bfloat16)
    out_bf = jax.block_until_ready(out_bf).astype(jnp.float32)
    ref_bf = jax.block_until_ready(_reference(xb, w1b, b1, w2b, b2, w3b, b3, P))
    np.testing.assert_allclose(np.asarray(out_bf), np.asarray(ref_bf),
                               rtol=3e-2, atol=3e-2)

    print("KERNEL_OK")
</pallas_src>

<mosaic_0001>
module attributes {stable_mosaic.version = 11 : i64} {
  func.func @_patch_embed_kernel(%arg0: i32, %arg1: memref<128x16xf32, #tpu.memory_space<vmem>>, %arg2: memref<128x16xf32, #tpu.memory_space<vmem>>, %arg3: memref<16x32xf32, #tpu.memory_space<vmem>>, %arg4: memref<16x32xf32, #tpu.memory_space<vmem>>, %arg5: memref<4x32x32xf32, #tpu.memory_space<vmem>>, %arg6: memref<1x32xf32, #tpu.memory_space<vmem>>, %arg7: memref<1x32xf32, #tpu.memory_space<vmem>>, %arg8: memref<1x32xf32, #tpu.memory_space<vmem>>, %arg9: memref<2x4x4x32xf32, #tpu.memory_space<vmem>>, %arg10: memref<2x64x32xf32, #tpu.memory_space<vmem>>, %arg11: memref<2x16x32xf32, #tpu.memory_space<vmem>>) attributes {dimension_semantics = [#tpu.dimension_semantics<parallel>], iteration_bounds = array<i64: 2>, scalar_prefetch = 0 : i64, scratch_operands = 2 : i64, tpu.core_type = #tpu.core_type<tc>, window_params = [{transform_indices = @transform_0, window_bounds = array<i64: 128, 16>}, {transform_indices = @transform_1, window_bounds = array<i64: 128, 16>}, {pipeline_mode = #tpu.pipeline_mode<synchronous>, transform_indices = @transform_2, window_bounds = array<i64: 16, 32>}, {pipeline_mode = #tpu.pipeline_mode<synchronous>, transform_indices = @transform_3, window_bounds = array<i64: 16, 32>}, {pipeline_mode = #tpu.pipeline_mode<synchronous>, transform_indices = @transform_4, window_bounds = array<i64: 4, 32, 32>}, {pipeline_mode = #tpu.pipeline_mode<synchronous>, transform_indices = @transform_5, window_bounds = array<i64: 1, 32>}, {pipeline_mode = #tpu.pipeline_mode<synchronous>, transform_indices = @transform_6, window_bounds = array<i64: 1, 32>}, {pipeline_mode = #tpu.pipeline_mode<synchronous>, transform_indices = @transform_7, window_bounds = array<i64: 1, 32>}, {transform_indices = @transform_8, window_bounds = array<i64: 2, 4, 4, 32>}]} {
    %c0 = arith.constant 0 : index
    %c0_0 = arith.constant 0 : index
    %0 = vector.load %arg1[%c0, %c0_0] : memref<128x16xf32, #tpu.memory_space<vmem>>, vector<128x16xf32>
    %c0_1 = arith.constant 0 : index
    %c0_2 = arith.constant 0 : index
    %1 = vector.load %arg3[%c0_1, %c0_2] : memref<16x32xf32, #tpu.memory_space<vmem>>, vector<16x32xf32>
    %cst = arith.constant dense<0.000000e+00> : vector<128x32xf32>
    %2 = tpu.matmul %0, %1, %cst {dimension_numbers = #tpu.dot_dimension_numbers<[1], [0], [0], [1], [0, 0, 1, 1], [], []>} : vector<128x16xf32>, vector<16x32xf32>, vector<128x32xf32> -> vector<128x32xf32>
    %c0_3 = arith.constant 0 : index
    %c0_4 = arith.constant 0 : index
    %3 = vector.load %arg6[%c0_3, %c0_4] : memref<1x32xf32, #tpu.memory_space<vmem>>, vector<1x32xf32>
    %4 = vector.broadcast %3 : vector<1x32xf32> to vector<128x32xf32>
    %5 = arith.addf %2, %4 : vector<128x32xf32>
    %c0_5 = arith.constant 0 : index
    %c0_6 = arith.constant 0 : index
    %6 = vector.load %arg2[%c0_5, %c0_6] : memref<128x16xf32, #tpu.memory_space<vmem>>, vector<128x16xf32>
    %c0_7 = arith.constant 0 : index
    %c0_8 = arith.constant 0 : index
    %7 = vector.load %arg4[%c0_7, %c0_8] : memref<16x32xf32, #tpu.memory_space<vmem>>, vector<16x32xf32>
    %cst_9 = arith.constant dense<0.000000e+00> : vector<128x32xf32>
    %8 = tpu.matmul %6, %7, %cst_9 {dimension_numbers = #tpu.dot_dimension_numbers<[1], [0], [0], [1], [0, 0, 1, 1], [], []>} : vector<128x16xf32>, vector<16x32xf32>, vector<128x32xf32> -> vector<128x32xf32>
    %c0_10 = arith.constant 0 : index
    %c0_11 = arith.constant 0 : index
    %9 = vector.load %arg7[%c0_10, %c0_11] : memref<1x32xf32, #tpu.memory_space<vmem>>, vector<1x32xf32>
    %10 = vector.broadcast %9 : vector<1x32xf32> to vector<128x32xf32>
    %11 = arith.addf %8, %10 : vector<128x32xf32>
    %12 = vector.shape_cast %5 : vector<128x32xf32> to vector<2x64x32xf32>
    %c0_12 = arith.constant 0 : index
    %c0_13 = arith.constant 0 : index
    %c0_14 = arith.constant 0 : index
    %13 = vector.load %arg10[%c0_12, %c0_13, %c0_14] : memref<2x64x32xf32, #tpu.memory_space<vmem>>, vector<2x64x32xf32>
    tpu.vector_store %arg10[%c0_12, %c0_13, %c0_14], %12 {strides = array<i32>} : memref<2x64x32xf32, #tpu.memory_space<vmem>>, vector<2x64x32xf32>,
    %cst_15 = arith.constant 0.000000e+00 : f32
    %14 = vector.broadcast %cst_15 : f32 to vector<32x32xf32>
    %c0_16 = arith.constant 0 : index
    %c0_17 = arith.constant 0 : index
    %c0_18 = arith.constant 0 : index
    %15 = tpu.strided_load %arg10[%c0_16, %c0_17, %c0_18] {strides = array<i32: 1, 4, 1>} : memref<2x64x32xf32, #tpu.memory_space<vmem>>, vector<2x16x32xf32>
    %16 = vector.shape_cast %15 : vector<2x16x32xf32> to vector<32x32xf32>
    %c0_19 = arith.constant 0 : index
    %c0_20 = arith.constant 0 : index
    %c0_21 = arith.constant 0 : index
    %17 = vector.load %arg5[%c0_19, %c0_20, %c0_21] : memref<4x32x32xf32, #tpu.memory_space<vmem>>, vector<1x32x32xf32>
    %18 = vector.shape_cast %17 : vector<1x32x32xf32> to vector<32x32xf32>
    %cst_22 = arith.constant dense<0.000000e+00> : vector<32x32xf32>
    %19 = tpu.matmul %16, %18, %cst_22 {dimension_numbers = #tpu.dot_dimension_numbers<[1], [0], [0], [1], [0, 0, 1, 1], [], []>} : vector<32x32xf32>, vector<32x32xf32>, vector<32x32xf32> -> vector<32x32xf32>
    %20 = arith.addf %14, %19 : vector<32x32xf32>
    %c0_23 = arith.constant 0 : index
    %c1 = arith.constant 1 : index
    %c0_24 = arith.constant 0 : index
    %21 = tpu.strided_load %arg10[%c0_23, %c1, %c0_24] {strides = array<i32: 1, 4, 1>} : memref<2x64x32xf32, #tpu.memory_space<vmem>>, vector<2x16x32xf32>
    %22 = vector.shape_cast %21 : vector<2x16x32xf32> to vector<32x32xf32>
    %c1_25 = arith.constant 1 : index
    %c0_26 = arith.constant 0 : index
    %c0_27 = arith.constant 0 : index
    %23 = vector.load %arg5[%c1_25, %c0_26, %c0_27] : memref<4x32x32xf32, #tpu.memory_space<vmem>>, vector<1x32x32xf32>
    %24 = vector.shape_cast %23 : vector<1x32x32xf32> to vector<32x32xf32>
    %cst_28 = arith.constant dense<0.000000e+00> : vector<32x32xf32>
    %25 = tpu.matmul %22, %24, %cst_28 {dimension_numbers = #tpu.dot_dimension_numbers<[1], [0], [0], [1], [0, 0, 1, 1], [], []>} : vector<32x32xf32>, vector<32x32xf32>, vector<32x32xf32> -> vector<32x32xf32>
    %26 = arith.addf %20, %25 : vector<32x32xf32>
    %c0_29 = arith.constant 0 : index
    %c2 = arith.constant 2 : index
    %c0_30 = arith.constant 0 : index
    %27 = tpu.strided_load %arg10[%c0_29, %c2, %c0_30] {strides = array<i32: 1, 4, 1>} : memref<2x64x32xf32, #tpu.memory_space<vmem>>, vector<2x16x32xf32>
    %28 = vector.shape_cast %27 : vector<2x16x32xf32> to vector<32x32xf32>
    %c2_31 = arith.constant 2 : index
    %c0_32 = arith.constant 0 : index
    %c0_33 = arith.constant 0 : index
    %29 = vector.load %arg5[%c2_31, %c0_32, %c0_33] : memref<4x32x32xf32, #tpu.memory_space<vmem>>, vector<1x32x32xf32>
    %30 = vector.shape_cast %29 : vector<1x32x32xf32> to vector<32x32xf32>
    %cst_34 = arith.constant dense<0.000000e+00> : vector<32x32xf32>
    %31 = tpu.matmul %28, %30, %cst_34 {dimension_numbers = #tpu.dot_dimension_numbers<[1], [0], [0], [1], [0, 0, 1, 1], [], []>} : vector<32x32xf32>, vector<32x32xf32>, vector<32x32xf32> -> vector<32x32xf32>
    %32 = arith.addf %26, %31 : vector<32x32xf32>
    %c0_35 = arith.constant 0 : index
    %c3 = arith.constant 3 : index
    %c0_36 = arith.constant 0 : index
    %33 = tpu.strided_load %arg10[%c0_35, %c3, %c0_36] {strides = array<i32: 1, 4, 1>} : memref<2x64x32xf32, #tpu.memory_space<vmem>>, vector<2x16x32xf32>
    %34 = vector.shape_cast %33 : vector<2x16x32xf32> to vector<32x32xf32>
    %c3_37 = arith.constant 3 : index
    %c0_38 = arith.constant 0 : index
    %c0_39 = arith.constant 0 : index
    %35 = vector.load %arg5[%c3_37, %c0_38, %c0_39] : memref<4x32x32xf32, #tpu.memory_space<vmem>>, vector<1x32x32xf32>
    %36 = vector.shape_cast %35 : vector<1x32x32xf32> to vector<32x32xf32>
    %cst_40 = arith.constant dense<0.000000e+00> : vector<32x32xf32>
    %37 = tpu.matmul %34, %36, %cst_40 {dimension_numbers = #tpu.dot_dimension_numbers<[1], [0], [0], [1], [0, 0, 1, 1], [], []>} : vector<32x32xf32>, vector<32x32xf32>, vector<32x32xf32> -> vector<32x32xf32>
    %38 = arith.addf %32, %37 : vector<32x32xf32>
    %c0_41 = arith.constant 0 : index
    %c0_42 = arith.constant 0 : index
    %39 = vector.load %arg8[%c0_41, %c0_42] : memref<1x32xf32, #tpu.memory_space<vmem>>, vector<1x32xf32>
    %40 = vector.broadcast %39 : vector<1x32xf32> to vector<32x32xf32>
    %41 = arith.addf %38, %40 : vector<32x32xf32>
    %42 = vector.shape_cast %41 : vector<32x32xf32> to vector<2x16x32xf32>
    %c0_43 = arith.constant 0 : index
    %c0_44 = arith.constant 0 : index
    %c0_45 = arith.constant 0 : index
    %43 = vector.load %arg11[%c0_43, %c0_44, %c0_45] : memref<2x16x32xf32, #tpu.memory_space<vmem>>, vector<2x16x32xf32>
    tpu.vector_store %arg11[%c0_43, %c0_44, %c0_45], %42 {strides = array<i32>} : memref<2x16x32xf32, #tpu.memory_space<vmem>>, vector<2x16x32xf32>,
    %44 = vector.shape_cast %5 : vector<128x32xf32> to vector<2x4x16x32xf32>
    %45 = vector.shape_cast %11 : vector<128x32xf32> to vector<2x4x16x32xf32>
    %46 = vector.extract_strided_slice %45 {offsets = [0, 0, 0, 0], sizes = [2, 1, 16, 32], strides = [1, 1, 1, 1]} : vector<2x4x16x32xf32> to vector<2x1x16x32xf32>
    %47 = vector.shape_cast %46 : vector<2x1x16x32xf32> to vector<2x16x32xf32>
    %48 = vector.shape_cast %47 : vector<2x16x32xf32> to vector<2x1x16x32xf32>
    %49 = vector.broadcast %48 : vector<2x1x16x32xf32> to vector<2x4x16x32xf32>
    %50 = arith.mulf %49, %44 : vector<2x4x16x32xf32>
    %cst_46 = arith.constant dense<0.000000e+00> : vector<2x4x32xf32>
    %51 = vector.multi_reduction <add>, %50, %cst_46 [2] : vector<2x4x16x32xf32> to vector<2x4x32xf32>
    %52 = arith.negf %51 : vector<2x4x32xf32>
    %53 = math.exp %52 : vector<2x4x32xf32>
    %cst_47 = arith.constant 1.000000e+00 : f32
    %54 = vector.broadcast %cst_47 : f32 to vector<2x4x32xf32>
    %55 = arith.addf %54, %53 : vector<2x4x32xf32>
    %56 = arith.divf %54, %55 : vector<2x4x32xf32>
    %c0_48 = arith.constant 0 : index
    %c0_49 = arith.constant 0 : index
    %c0_50 = arith.constant 0 : index
    %57 = tpu.strided_load %arg11[%c0_48, %c0_49, %c0_50] {strides = array<i32: 1, 4, 1>} : memref<2x16x32xf32, #tpu.memory_space<vmem>>, vector<2x4x32xf32>
    %58 = arith.mulf %57, %56 : vector<2x4x32xf32>
    %c0_51 = arith.constant 0 : index
    %c0_52 = arith.constant 0 : index
    %c0_53 = arith.constant 0 : index
    %c0_54 = arith.constant 0 : index
    %59 = vector.load %arg9[%c0_51, %c0_52, %c0_53, %c0_54] : memref<2x4x4x32xf32, #tpu.memory_space<vmem>>, vector<2x1x4x32xf32>
    %60 = vector.shape_cast %59 : vector<2x1x4x32xf32> to vector<2x4x32xf32>
    %61 = vector.shape_cast %58 : vector<2x4x32xf32> to vector<2x1x4x32xf32>
    tpu.vector_store %arg9[%c0_51, %c0_52, %c0_53, %c0_54], %61 {strides = array<i32>} : memref<2x4x4x32xf32, #tpu.memory_space<vmem>>, vector<2x1x4x32xf32>,
    %62 = vector.extract_strided_slice %45 {offsets = [0, 1, 0, 0], sizes = [2, 1, 16, 32], strides = [1, 1, 1, 1]} : vector<2x4x16x32xf32> to vector<2x1x16x32xf32>
    %63 = vector.shape_cast %62 : vector<2x1x16x32xf32> to vector<2x16x32xf32>
    %64 = vector.shape_cast %63 : vector<2x16x32xf32> to vector<2x1x16x32xf32>
    %65 = vector.broadcast %64 : vector<2x1x16x32xf32> to vector<2x4x16x32xf32>
    %66 = arith.mulf %65, %44 : vector<2x4x16x32xf32>
    %cst_55 = arith.constant dense<0.000000e+00> : vector<2x4x32xf32>
    %67 = vector.multi_reduction <add>, %66, %cst_55 [2] : vector<2x4x16x32xf32> to vector<2x4x32xf32>
    %68 = arith.negf %67 : vector<2x4x32xf32>
    %69 = math.exp %68 : vector<2x4x32xf32>
    %cst_56 = arith.constant 1.000000e+00 : f32
    %70 = vector.broadcast %cst_56 : f32 to vector<2x4x32xf32>
    %71 = arith.addf %70, %69 : vector<2x4x32xf32>
    %72 = arith.divf %70, %71 : vector<2x4x32xf32>
    %c0_57 = arith.constant 0 : index
    %c1_58 = arith.constant 1 : index
    %c0_59 = arith.constant 0 : index
    %73 = tpu.strided_load %arg11[%c0_57, %c1_58, %c0_59] {strides = array<i32: 1, 4, 1>} : memref<2x16x32xf32, #tpu.memory_space<vmem>>, vector<2x4x32xf32>
    %74 = arith.mulf %73, %72 : vector<2x4x32xf32>
    %c0_60 = arith.constant 0 : index
    %c1_61 = arith.constant 1 : index
    %c0_62 = arith.constant 0 : index
    %c0_63 = arith.constant 0 : index
    %75 = vector.load %arg9[%c0_60, %c1_61, %c0_62, %c0_63] : memref<2x4x4x32xf32, #tpu.memory_space<vmem>>, vector<2x1x4x32xf32>
    %76 = vector.shape_cast %75 : vector<2x1x4x32xf32> to vector<2x4x32xf32>
    %77 = vector.shape_cast %74 : vector<2x4x32xf32> to vector<2x1x4x32xf32>
    tpu.vector_store %arg9[%c0_60, %c1_61, %c0_62, %c0_63], %77 {strides = array<i32>} : memref<2x4x4x32xf32, #tpu.memory_space<vmem>>, vector<2x1x4x32xf32>,
    %78 = vector.extract_strided_slice %45 {offsets = [0, 2, 0, 0], sizes = [2, 1, 16, 32], strides = [1, 1, 1, 1]} : vector<2x4x16x32xf32> to vector<2x1x16x32xf32>
    %79 = vector.shape_cast %78 : vector<2x1x16x32xf32> to vector<2x16x32xf32>
    %80 = vector.shape_cast %79 : vector<2x16x32xf32> to vector<2x1x16x32xf32>
    %81 = vector.broadcast %80 : vector<2x1x16x32xf32> to vector<2x4x16x32xf32>
    %82 = arith.mulf %81, %44 : vector<2x4x16x32xf32>
    %cst_64 = arith.constant dense<0.000000e+00> : vector<2x4x32xf32>
    %83 = vector.multi_reduction <add>, %82, %cst_64 [2] : vector<2x4x16x32xf32> to vector<2x4x32xf32>
    %84 = arith.negf %83 : vector<2x4x32xf32>
    %85 = math.exp %84 : vector<2x4x32xf32>
    %cst_65 = arith.constant 1.000000e+00 : f32
    %86 = vector.broadcast %cst_65 : f32 to vector<2x4x32xf32>
    %87 = arith.addf %86, %85 : vector<2x4x32xf32>
    %88 = arith.divf %86, %87 : vector<2x4x32xf32>
    %c0_66 = arith.constant 0 : index
    %c2_67 = arith.constant 2 : index
    %c0_68 = arith.constant 0 : index
    %89 = tpu.strided_load %arg11[%c0_66, %c2_67, %c0_68] {strides = array<i32: 1, 4, 1>} : memref<2x16x32xf32, #tpu.memory_space<vmem>>, vector<2x4x32xf32>
    %90 = arith.mulf %89, %88 : vector<2x4x32xf32>
    %c0_69 = arith.constant 0 : index
    %c2_70 = arith.constant 2 : index
    %c0_71 = arith.constant 0 : index
    %c0_72 = arith.constant 0 : index
    %91 = vector.load %arg9[%c0_69, %c2_70, %c0_71, %c0_72] : memref<2x4x4x32xf32, #tpu.memory_space<vmem>>, vector<2x1x4x32xf32>
    %92 = vector.shape_cast %91 : vector<2x1x4x32xf32> to vector<2x4x32xf32>
    %93 = vector.shape_cast %90 : vector<2x4x32xf32> to vector<2x1x4x32xf32>
    tpu.vector_store %arg9[%c0_69, %c2_70, %c0_71, %c0_72], %93 {strides = array<i32>} : memref<2x4x4x32xf32, #tpu.memory_space<vmem>>, vector<2x1x4x32xf32>,
    %94 = vector.extract_strided_slice %45 {offsets = [0, 3, 0, 0], sizes = [2, 1, 16, 32], strides = [1, 1, 1, 1]} : vector<2x4x16x32xf32> to vector<2x1x16x32xf32>
    %95 = vector.shape_cast %94 : vector<2x1x16x32xf32> to vector<2x16x32xf32>
    %96 = vector.shape_cast %95 : vector<2x16x32xf32> to vector<2x1x16x32xf32>
    %97 = vector.broadcast %96 : vector<2x1x16x32xf32> to vector<2x4x16x32xf32>
    %98 = arith.mulf %97, %44 : vector<2x4x16x32xf32>
    %cst_73 = arith.constant dense<0.000000e+00> : vector<2x4x32xf32>
    %99 = vector.multi_reduction <add>, %98, %cst_73 [2] : vector<2x4x16x32xf32> to vector<2x4x32xf32>
    %100 = arith.negf %99 : vector<2x4x32xf32>
    %101 = math.exp %100 : vector<2x4x32xf32>
    %cst_74 = arith.constant 1.000000e+00 : f32
    %102 = vector.broadcast %cst_74 : f32 to vector<2x4x32xf32>
    %103 = arith.addf %102, %101 : vector<2x4x32xf32>
    %104 = arith.divf %102, %103 : vector<2x4x32xf32>
    %c0_75 = arith.constant 0 : index
    %c3_76 = arith.constant 3 : index
    %c0_77 = arith.constant 0 : index
    %105 = tpu.strided_load %arg11[%c0_75, %c3_76, %c0_77] {strides = array<i32: 1, 4, 1>} : memref<2x16x32xf32, #tpu.memory_space<vmem>>, vector<2x4x32xf32>
    %106 = arith.mulf %105, %104 : vector<2x4x32xf32>
    %c0_78 = arith.constant 0 : index
    %c3_79 = arith.constant 3 : index
    %c0_80 = arith.constant 0 : index
    %c0_81 = arith.constant 0 : index
    %107 = vector.load %arg9[%c0_78, %c3_79, %c0_80, %c0_81] : memref<2x4x4x32xf32, #tpu.memory_space<vmem>>, vector<2x1x4x32xf32>
    %108 = vector.shape_cast %107 : vector<2x1x4x32xf32> to vector<2x4x32xf32>
    %109 = vector.shape_cast %106 : vector<2x4x32xf32> to vector<2x1x4x32xf32>
    tpu.vector_store %arg9[%c0_78, %c3_79, %c0_80, %c0_81], %109 {strides = array<i32>} : memref<2x4x4x32xf32, #tpu.memory_space<vmem>>, vector<2x1x4x32xf32>,
    return
  }
  func.func @transform_0(%arg0: i32) -> (i32, i32) {
    %c0_i32 = arith.constant 0 : i32
    %c0_i32_0 = arith.constant 0 : i32
    return %arg0, %c0_i32 : i32, i32
  }
  func.func @transform_1(%arg0: i32) -> (i32, i32) {
    %c0_i32 = arith.constant 0 : i32
    %c0_i32_0 = arith.constant 0 : i32
    return %arg0, %c0_i32 : i32, i32
  }
  func.func @transform_2(%arg0: i32) -> (i32, i32) {
    %c0_i32 = arith.constant 0 : i32
    %c0_i32_0 = arith.constant 0 : i32
    %c0_i32_1 = arith.constant 0 : i32
    return %c0_i32, %c0_i32_0 : i32, i32
  }
  func.func @transform_3(%arg0: i32) -> (i32, i32) {
    %c0_i32 = arith.constant 0 : i32
    %c0_i32_0 = arith.constant 0 : i32
    %c0_i32_1 = arith.constant 0 : i32
    return %c0_i32, %c0_i32_0 : i32, i32
  }
  func.func @transform_4(%arg0: i32) -> (i32, i32, i32) {
    %c0_i32 = arith.constant 0 : i32
    %c0_i32_0 = arith.constant 0 : i32
    %c0_i32_1 = arith.constant 0 : i32
    %c0_i32_2 = arith.constant 0 : i32
    return %c0_i32, %c0_i32_0, %c0_i32_1 : i32, i32, i32
  }
  func.func @transform_5(%arg0: i32) -> (i32, i32) {
    %c0_i32 = arith.constant 0 : i32
    %c0_i32_0 = arith.constant 0 : i32
    %c0_i32_1 = arith.constant 0 : i32
    return %c0_i32, %c0_i32_0 : i32, i32
  }
  func.func @transform_6(%arg0: i32) -> (i32, i32) {
    %c0_i32 = arith.constant 0 : i32
    %c0_i32_0 = arith.constant 0 : i32
    %c0_i32_1 = arith.constant 0 : i32
    return %c0_i32, %c0_i32_0 : i32, i32
  }
  func.func @transform_7(%arg0: i32) -> (i32, i32) {
    %c0_i32 = arith.constant 0 : i32
    %c0_i32_0 = arith.constant 0 : i32
    %c0_i32_1 = arith.constant 0 : i32
    return %c0_i32, %c0_i32_0 : i32, i32
  }
  func.func @transform_8(%arg0: i32) -> (i32, i32, i32, i32) {
    %c0_i32 = arith.constant 0 : i32
    %c0_i32_0 = arith.constant 0 : i32
    %c0_i32_1 = arith.constant 0 : i32
    %c0_i32_2 = arith.constant 0 : i32
    return %arg0, %c0_i32, %c0_i32_0, %c0_i32_1 : i32, i32, i32, i32
  }
}

</mosaic_0001>

<bundles_post_ra>
// kernel: tpu_custom_call.1
= control target key start
LH: loop header
LB: loop body
LE: loop exit
PB: predicated region body
PF: predicated region fallthrough
CT: control target
= control target key end

     0   :  { %13 = vsyncpa [#allocation5], 0  ;;  %s3936_s0 = inlined_call_operand.vmem [shape: f32[256,16], index: 0, kind: input, shape index: {}]   ;;  %s3937_s1 = inlined_call_operand.vmem [shape: f32[256,16], index: 1, kind: input, shape index: {}]   ;;  %s3938_s2 = inlined_call_operand.vmem [shape: f32[16,32], index: 2, kind: input, shape index: {}]   ;;  %s3939_s3 = inlined_call_operand.vmem [shape: f32[16,32], index: 3, kind: input, shape index: {}]   ;;  %s3940_s4 = inlined_call_operand.vmem [shape: f32[4,32,32], index: 4, kind: input, shape index: {}]   ;;  %s3941_s5 = inlined_call_operand.vmem [shape: f32[1,32], index: 5, kind: input, shape index: {}]   ;;  %s3942_s6 = inlined_call_operand.vmem [shape: f32[1,32], index: 6, kind: input, shape index: {}]   ;;  %s3943_s7 = inlined_call_operand.vmem [shape: f32[1,32], index: 7, kind: input, shape index: {}]   ;;  %s3944_s8 = inlined_call_operand.hbm [shape: f32[4,4,4,32], index: 8, kind: output, shape index: {}]  }
   0x1   :  { %15 = vsyncpa [#allocation5 + $0x1], 0  ;;  %s2408_s27 = smov 0   ;;  %s2410_s28 = smov 0  }
   0x2   :  { %s2412_s29 = smov 0   ;;  %s2414_s30 = smov 0  }
   0x3 LB: > { %s2429_s9 = sadd.s32 4294967295, %s2359_s30   ;;  %s2004_s10 = sadd.s32 4294967294, %s2359_s30   ;;  %s2359_s30 = sphi %s2414_s30, %s4088_s30   ;;  %s2355_s29 = sphi %s2412_s29, %s4087_s29   ;;  %s2351_s28 = sphi %s2410_s28, %s4086_s28   ;;  %s2347_s27 = sphi %s2408_s27, %s4085_s27  }
   0x4   : > { %s2433_s11 = sadd.s32 1, %s2359_s30   ;;  %s206_s12 = sadd.s32 1, %s2355_s29 }
   0x5   : > { %s203_s13 = ssub.s32 %s2359_s30, %s2433_s11  ;;  %p216_p0 = scmp.ne.s32.totalorder %s2355_s29, %s2351_s28 }
   0x6   : > { %p204_p1 = scmp.eq.s32.totalorder %s203_s13, 0  ;;  %p217_p2 = scmp.eq.s32.totalorder %s2429_s9, 1 }
   0x7   : > { %p222_p3 = scmp.ne.s32.totalorder %s2351_s28, %s2347_s27  ;;  %p223_p4 = scmp.eq.s32.totalorder %s2004_s10, 1 }
   0x8   : > { %s2444_s14 = scalar_select %p204_p1, %s2355_s29, %s206_s12  }
   0x9   : > { %p2446_p5 = por %p217_p2, %p216_p0  ;;  %p2450_p6 = por %p223_p4, %p222_p3 }
   0xa   : > { %p2007_p7 = scmp.ge.s32.totalorder %s2359_s30, 1  ;;  %p277_p8 = scmp.lt.s32.totalorder %s2359_s30, 3 }
   0xc   : > { %p278_p9 = pnand %p2007_p7, %p277_p8 }
   0xe   : > { %281 = sbr.rel (%p278_p9) target bundleno = 542 (0x21e), region = 52 }
  0x13   : > { %v346_v0 = vld [vmem:[%s3938_s2 + $0x8] sm:$0xff]  ;;  %v345_v2 = vld [vmem:[%s3938_s2] sm:$0xff]  ;;  %s2009_s23 = sshll.u32 %s2429_s9, 4  ;;  %vm351_vm0 = vcmask 130048   ;;  %v2048_v37 = vld [vmem:[%s3940_s4 + $0x38] sm:$0xff]  ;;  %vm3949_vm1 = vcmask 261120  }
  0x14   : > { %v482_v1 = vld [vmem:[%s3939_s3 + $0x8] sm:$0xff]  ;;  %414 = vmatpush.msra.mxu0 %v346_v0  ;;  %v481_v3 = vld [vmem:[%s3939_s3] sm:$0xff]  ;;  %p317_p10 = scmp.lt.s32.totalorder %s2009_s23, 31  ;;  %2119 = vmatpush.msra.mxu2 %v346_v0  ;;  %v627_v38 = vld [vmem:[%s3940_s4 + $0x18] sm:$0xff]  ;;  %vm3946_vm3 = vcmask 1041409  }
  0x15   : > { %549 = vmatpush.msra.mxu1 %v482_v1  ;;  %2121 = vmatpush.msra.mxu3 %v482_v1  ;;  %v2546_v36 = vld [vmem:[%s3941_s5] ss:$0 sm:$0xff]  ;;  %v2047_v43 = vld [vmem:[%s3940_s4 + $0x30] sm:$0xff]  ;;  %v2046_v45 = vld [vmem:[%s3940_s4 + $0x28] sm:$0xff] }
  0x16   : > { %415 = vmatpush.msra.mxu0 %v345_v2  ;;  %s4090_s23 = smov (!%p317_p10, %s2009_s23), 31  ;;  %2120 = vmatpush.msra.mxu2 %v345_v2  ;;  %v2560_v42 = vld [vmem:[%s3942_s6] ss:$0 sm:$0xff]  ;;  %v626_v44 = vld [vmem:[%s3940_s4 + $0x10] sm:$0xff]  ;;  %v625_v46 = vld [vmem:[%s3940_s4 + $0x8] sm:$0xff] }
  0x17   : > { %550 = vmatpush.msra.mxu1 %v481_v3  ;;  %2122 = vmatpush.msra.mxu3 %v481_v3  ;;  %s2010_s26 = sshll.u32 %s4090_s23, 3  ;;  %v2045_v48 = vld [vmem:[%s3940_s4 + $0x20] sm:$0xff]  ;;  %s313_s23 = sand.u32 1, %s2351_s28  }
  0x18   : > { %s2472_s13 = scalar_lea.vmem %s3936_s0, %s2010_s26  ;;  %s2477_s19 = scalar_lea.vmem %s3937_s1, %s2010_s26  ;;  %665 = vmatpush.msrb.mxu2 %v2048_v37  ;;  %v624_v49 = vld [vmem:[%s3940_s4] sm:$0xff] }
  0x19   : > { %v329_v4 = vld [vmem:[%s2472_s13] sm:$0xff]  ;;  %v330_v8 = vld [vmem:[%s2472_s13 + $0x8] sm:$0xff]  ;;  %v331_v12 = vld [vmem:[%s2472_s13 + $0x10] sm:$0xff]  ;;  %706 = vmatpush.msrb.mxu3 %v627_v38  ;;  %s2008_s24 = sshll.u32 %s313_s23, 5  ;;  %s2118_s26 = sshll.u32 %s2429_s9, 5 }
  0x1a   : > { %v465_v5 = vld [vmem:[%s2477_s19] sm:$0xff]  ;;  %2013 = vmatmul.msk.f32.vlgmr.msra.gmra.mxu0 %vm351_vm0, %v329_v4  ;;  %v466_v9 = vld [vmem:[%s2477_s19 + $0x8] sm:$0xff]  ;;  %v467_v13 = vld [vmem:[%s2477_s19 + $0x10] sm:$0xff]  ;;  %666 = vmatpush.msrb.mxu2 %v2047_v43  ;;  %s315_s25 = scalar_lea.vmem [#allocation4], %s2008_s24  ;;  %s1914_s9 = scalar_lea.sflag [#allocation5], %s313_s23 }
  0x1b   : > { %2029 = vmatmul.msk.f32.vlgmr.msra.gmra.mxu1 %vm351_vm0, %v465_v5  ;;  %v477_v6 = vld [vmem:[%s2477_s19 + $0x60] sm:$0xff]  ;;  %v478_v10 = vld [vmem:[%s2477_s19 + $0x68] sm:$0xff]  ;;  %v479_v14 = vld [vmem:[%s2477_s19 + $0x70] sm:$0xff]  ;;  %707 = vmatpush.msrb.mxu3 %v626_v44  ;;  %s1927_s17 = sshll.u32 %s315_s25, 4  ;;  %s2317_s24 = scalar_lea.hbm %s3944_s8, 64  ;;  %s1928_s17 = int_to_ptr.vmem [resolvable:$true] %s1927_s17 }
  0x1c   : > { %2041 = vmatmul.msk.f32.vlgmr.msra.gmra.mxu3 %vm351_vm0, %v477_v6  ;;  %v341_v7 = vld [vmem:[%s2472_s13 + $0x60] sm:$0xff]  ;;  %v342_v11 = vld [vmem:[%s2472_s13 + $0x68] sm:$0xff]  ;;  %v343_v15 = vld [vmem:[%s2472_s13 + $0x70] sm:$0xff]  ;;  %667 = vmatpush.msrb.mxu2 %v2046_v45 }
  0x1d   : > { %2025 = vmatmul.msk.f32.vlgmr.msra.gmra.mxu2 %vm351_vm0, %v341_v7  ;;  %v332_v16 = vld [vmem:[%s2472_s13 + $0x18] sm:$0xff]  ;;  %v333_v20 = vld [vmem:[%s2472_s13 + $0x20] sm:$0xff]  ;;  %v334_v22 = vld [vmem:[%s2472_s13 + $0x28] sm:$0xff]  ;;  %708 = vmatpush.msrb.mxu3 %v625_v46 }
  0x1e   : > { %v468_v17 = vld [vmem:[%s2477_s19 + $0x18] sm:$0xff]  ;;  %v469_v21 = vld [vmem:[%s2477_s19 + $0x20] sm:$0xff]  ;;  %v470_v23 = vld [vmem:[%s2477_s19 + $0x28] sm:$0xff]  ;;  %668 = vmatpush.msrb.mxu2 %v2045_v48 }
  0x1f   : > { %v480_v18 = vld [vmem:[%s2477_s19 + $0x78] sm:$0xff]  ;;  %v335_v24 = vld [vmem:[%s2472_s13 + $0x30] sm:$0xff]  ;;  %v337_v28 = vld [vmem:[%s2472_s13 + $0x40] sm:$0xff]  ;;  %709 = vmatpush.msrb.mxu3 %v624_v49 }
  0x20   : > { %v344_v19 = vld [vmem:[%s2472_s13 + $0x78] sm:$0xff]  ;;  %v471_v25 = vld [vmem:[%s2477_s19 + $0x30] sm:$0xff]  ;;  %v473_v29 = vld [vmem:[%s2477_s19 + $0x40] sm:$0xff] }
  0x21   : > { %v336_v26 = vld [vmem:[%s2472_s13 + $0x38] sm:$0xff]  ;;  %v338_v30 = vld [vmem:[%s2472_s13 + $0x48] sm:$0xff]  ;;  %v339_v32 = vld [vmem:[%s2472_s13 + $0x50] sm:$0xff] }
  0x22   : > { %2014 = vmatmul.msk.f32.gmra.mxu0 %vm351_vm0, %v330_v8  ;;  %v472_v27 = vld [vmem:[%s2477_s19 + $0x38] sm:$0xff]  ;;  %v474_v31 = vld [vmem:[%s2477_s19 + $0x48] sm:$0xff]  ;;  %v475_v33 = vld [vmem:[%s2477_s19 + $0x50] sm:$0xff] }
  0x23   : > { %2030 = vmatmul.msk.f32.gmra.mxu1 %vm351_vm0, %v466_v9  ;;  %v340_v34 = vld [vmem:[%s2472_s13 + $0x58] sm:$0xff]  ;;  %s1926_s13 = scalar_lea.hbm %s3944_s8, %s2118_s26 }
  0x24   : > { %2042 = vmatmul.msk.f32.gmra.mxu3 %vm351_vm0, %v478_v10  ;;  %v476_v35 = vld [vmem:[%s2477_s19 + $0x58] sm:$0xff]  ;;  %s1929_s18 = sshll.u32 %s1926_s13, 4  ;;  %s1930_s18 = int_to_ptr.hbm [resolvable:$true] %s1929_s18 }
  0x25   : > { %2026 = vmatmul.msk.f32.gmra.mxu2 %vm351_vm0, %v342_v11  ;;  %s2311_s19 = sshra.s32 %s1930_s18, 4  ;;  %s2312_s19 = int_to_ptr.hbm [resolvable:$true] %s2311_s19 }
  0x26   : > { %s2313_s20 = scalar_lea.hbm %s2312_s19, 32  ;;  %p2318_p0 = scmp.lt.s32.totalorder %s2312_s19, %s3944_s8 }
  0x27   : > { %p2314_p11 = scmp.ne.s32.totalorder %s2312_s19, %s2313_s20  ;;  %p2319_p1 = scmp.lt.s32.totalorder %s2317_s24, %s2313_s20 }
  0x29   : > { %p2315_p12 = pnand %p2314_p11, %p2446_p5  ;;  %p2320_p2 = por %p2319_p1, %p2318_p0 }
  0x2a   : > { %2015 = vmatmul.msk.f32.gmra.mxu0 %vm351_vm0, %v331_v12 }
  0x2b   : > { %2031 = vmatmul.msk.f32.gmra.mxu1 %vm351_vm0, %v467_v13  ;;  %p2316_p13 = pneg %p2315_p12 }
  0x2c   : > { %2043 = vmatmul.msk.f32.gmra.mxu3 %vm351_vm0, %v479_v14 }
  0x2d   : > { %2027 = vmatmul.msk.f32.gmra.mxu2 %vm351_vm0, %v343_v15  ;;  %p2321_p3 = pnand %p2320_p2, %p2316_p13 }
  0x32   : > { %2016 = vmatmul.msk.f32.gmra.mxu0 %vm351_vm0, %v332_v16 }
  0x33   : > { %2032 = vmatmul.msk.f32.gmra.mxu1 %vm351_vm0, %v468_v17 }
  0x34   : > { %2044 = vmatmul.msk.f32.gmra.mxu3 %vm351_vm0, %v480_v18 }
  0x35   : > { %2028 = vmatmul.msk.f32.gmra.mxu2 %vm351_vm0, %v344_v19 }
  0x3a   : > { %2017 = vmatmul.msk.f32.gmra.mxu0 %vm351_vm0, %v333_v20 }
  0x3b   : > { %2033 = vmatmul.msk.f32.gmra.mxu1 %vm351_vm0, %v469_v21 }
  0x42   : > { %2018 = vmatmul.msk.f32.gmra.mxu0 %vm351_vm0, %v334_v22 }
  0x43   : > { %2034 = vmatmul.msk.f32.gmra.mxu1 %vm351_vm0, %v470_v23 }
  0x4a   : > { %2019 = vmatmul.msk.f32.gmra.mxu0 %vm351_vm0, %v335_v24 }
  0x4b   : > { %2035 = vmatmul.msk.f32.gmra.mxu1 %vm351_vm0, %v471_v25 }
  0x52   : > { %2020 = vmatmul.msk.f32.gmra.mxu0 %vm351_vm0, %v336_v26 }
  0x53   : > { %2036 = vmatmul.msk.f32.gmra.mxu1 %vm351_vm0, %v472_v27 }
  0x5a   : > { %2021 = vmatmul.msk.f32.gmra.mxu0 %vm351_vm0, %v337_v28 }
  0x5b   : > { %2037 = vmatmul.msk.f32.gmra.mxu1 %vm351_vm0, %v473_v29 }
  0x62   : > { %2022 = vmatmul.msk.f32.gmra.mxu0 %vm351_vm0, %v338_v30 }
  0x63   : > { %2038 = vmatmul.msk.f32.gmra.mxu1 %vm351_vm0, %v474_v31 }
  0x6a   : > { %2023 = vmatmul.msk.f32.gmra.mxu0 %vm351_vm0, %v339_v32 }
  0x6b   : > { %2039 = vmatmul.msk.f32.gmra.mxu1 %vm351_vm0, %v475_v33 }
  0x72   : > { %2024 = vmatmul.msk.f32.gmra.mxu0 %vm351_vm0, %v340_v34 }
  0x73   : > { %2040 = vmatmul.msk.f32.gmra.mxu1 %vm351_vm0, %v476_v35  ;;  %vm3947_vm0 = vcmask 1042434  }
  0x97   : > { %v417_v39 = vpop.f32.mrf.mxu0 }
  0x98   : > { %v552_v40 = vpop.f32.mrf.mxu1  ;;  %v2555_v41 = vadd.f32 %v2546_v36, %v417_v39 }
  0x99   : > { %v2577_v47 = vadd.f32 %v2560_v42, %v552_v40 }
  0x9a   : > { %601 = vst.msk [vmem:[#allocation2] sm:$0xff] %vm3949_vm1, %v2555_v41 }
  0x9b   : > { %v851_v52 = vmul.f32 %v2577_v47, %v2555_v41 }
  0x9d   : > { %v867_v56 = vsel %vm3949_vm1, %v851_v52, 0.0 }
  0x9f   : > { %v420_v50 = vpop.f32.mrf.mxu0 }
  0xa0   : > { %v555_v51 = vpop.f32.mrf.mxu1  ;;  %v2588_v53 = vadd.f32 %v2546_v36, %v420_v50 }
  0xa1   : > { %v2591_v54 = vadd.f32 %v2560_v42, %v555_v51 }
  0xa2   : > { %602 = vst.msk [vmem:[#allocation2 + $0x8] sm:$0xff] %vm3949_vm1, %v2588_v53 }
  0xa3   : > { %v852_v55 = vmul.f32 %v2591_v54, %v2588_v53 }
  0xa5   : > { %v868_v57 = vsel %vm3949_vm1, %v852_v55, 0.0 }
  0xa6   : > { %v869_v58 = vadd.f32 %v868_v57, %v867_v56 }
  0xa7   : > { %v423_v60 = vpop.f32.mrf.mxu0 }
  0xa8   : > { %v870_v59 = vrot.slane %v869_v58, 4  ;;  %v558_v61 = vpop.f32.mrf.mxu1  ;;  %v2600_v62 = vadd.f32 %v2546_v36, %v423_v60  ;;  %v453_v60 = vpop.f32.mrf.mxu2 }
  0xa9   : > { %v2607_v2 = vadd.f32 %v2560_v42, %v558_v61 }
  0xaa   : > { %v871_v63 = vadd.f32 %v870_v59, %v869_v58  ;;  %603 = vst.msk [vmem:[#allocation2 + $0x10] sm:$0xff] %vm3949_vm1, %v2600_v62  ;;  %v853_v0 = vmul.f32 %v2577_v47, %v2600_v62 }
  0xab   : > { %v1118_v5 = vmul.f32 %v2607_v2, %v2555_v41  ;;  %v1120_v8 = vmul.f32 %v2607_v2, %v2600_v62 }
  0xac   : > { %v872_v1 = vrot.slane %v871_v63, 2  ;;  %v876_v16 = vsel %vm3949_vm1, %v853_v0, 0.0 }
  0xad   : > { %v1134_v17 = vsel %vm3949_vm1, %v1118_v5, 0.0  ;;  %v1143_v18 = vsel %vm3949_vm1, %v1120_v8, 0.0 }
  0xae   : > { %v873_v3 = vadd.f32 %v872_v1, %v871_v63  ;;  %v2669_v1 = vadd.f32 %v2546_v36, %v453_v60 }
  0xaf   : > { %v426_v6 = vpop.f32.mrf.mxu0 }
  0xb0   : > { %v874_v4 = vrot.slane %v873_v3, 1  ;;  %v561_v7 = vpop.f32.mrf.mxu1  ;;  %v2614_v9 = vadd.f32 %v2546_v36, %v426_v6  ;;  %613 = vst.msk [vmem:[#allocation2 + $0x60] sm:$0xff] %vm3949_vm1, %v2669_v1 }
  0xb1   : > { %v2617_v10 = vadd.f32 %v2560_v42, %v561_v7 }
  0xb2   : > { %v875_v11 = vadd.f32 %v874_v4, %v873_v3  ;;  %604 = vst.msk [vmem:[#allocation2 + $0x18] sm:$0xff] %vm3949_vm1, %v2614_v9  ;;  %v854_v12 = vmul.f32 %v2591_v54, %v2614_v9 }
  0xb3   : > { %v1119_v13 = vmul.f32 %v2617_v10, %v2588_v53  ;;  %v1121_v14 = vmul.f32 %v2617_v10, %v2614_v9 }
  0xb4   : > { %v2073_v15 = vmul.f32 -1.442695, %v875_v11  ;;  %v877_v19 = vsel %vm3949_vm1, %v854_v12, 0.0 }
  0xb5   : > { %v1135_v20 = vsel %vm3949_vm1, %v1119_v13, 0.0  ;;  %v1144_v21 = vsel %vm3949_vm1, %v1121_v14, 0.0  ;;  %v878_v22 = vadd.f32 %v877_v19, %v876_v16 }
  0xb6   : > { %2167 = vpow2.f32 %v2073_v15  ;;  %v1136_v23 = vadd.f32 %v1135_v20, %v1134_v17  ;;  %v1145_v24 = vadd.f32 %v1144_v21, %v1143_v18 }
  0xb7   : > { %v879_v25 = vrot.slane %v878_v22, 4  ;;  %v429_v27 = vpop.f32.mrf.mxu0 }
  0xb8   : > { %v1137_v26 = vrot.slane %v1136_v23, 4  ;;  %v564_v28 = vpop.f32.mrf.mxu1  ;;  %v1146_v29 = vrot.slane %v1145_v24, 4  ;;  %v2634_v30 = vadd.f32 %v2546_v36, %v429_v27 }
  0xb9   : > { %v880_v31 = vadd.f32 %v879_v25, %v878_v22  ;;  %v629_v32 = vld [vmem:[#allocation2 + $0x1] ss:$4 sm:$0xff]  ;;  %v617_v33 = vld [vmem:[#allocation2] ss:$4 sm:$0xff]  ;;  %v2643_v40 = vadd.f32 %v2560_v42, %v564_v28 }
  0xba   : > { %v1138_v34 = vadd.f32 %v1137_v26, %v1136_v23  ;;  %605 = vst.msk [vmem:[#allocation2 + $0x20] sm:$0xff] %vm3949_vm1, %v2634_v30  ;;  %v855_v35 = vmul.f32 %v2577_v47, %v2634_v30  ;;  %2049 = vmatmul.msk.f32.vlgmr.msrb.gmra.mxu2 %vm3949_vm1, %v629_v32  ;;  %2053 = vmatmul.msk.f32.vlgmr.msrb.gmra.mxu3 %vm3949_vm1, %v617_v33 }
  0xbb   : > { %v881_v38 = vrot.slane %v880_v31, 2  ;;  %v1147_v39 = vadd.f32 %v1146_v29, %v1145_v24  ;;  %v1122_v48 = vmul.f32 %v2607_v2, %v2634_v30  ;;  %v1383_v52 = vmul.f32 %v2643_v40, %v2555_v41 }
  0xbc   : > { %v2168_v37 = vpop.eup %2167  ;;  %v1139_v45 = vrot.slane %v1138_v34, 2  ;;  %v1385_v55 = vmul.f32 %v2643_v40, %v2600_v62  ;;  %v1387_v58 = vmul.f32 %v2643_v40, %v2634_v30  ;;  %v885_v4 = vsel %vm3949_vm1, %v855_v35, 0.0 }
  0xbd   : > { %v2645_v43 = vadd.f32 1.0, %v2168_v37  ;;  %v882_v44 = vadd.f32 %v881_v38, %v880_v31  ;;  %v1148_v51 = vrot.slane %v1147_v39, 2  ;;  %v1152_v5 = vsel %vm3949_vm1, %v1122_v48, 0.0 }
  0xbe   : > { %v1140_v61 = vadd.f32 %v1139_v45, %v1138_v34  ;;  %v1399_v14 = vsel %vm3949_vm1, %v1383_v52, 0.0  ;;  %v1408_v21 = vsel %vm3949_vm1, %v1385_v55, 0.0  ;;  %v1417_v24 = vsel %vm3949_vm1, %v1387_v58, 0.0 }
  0xbf   : > { %v883_v46 = vrot.slane %v882_v44, 1  ;;  %v432_v49 = vpop.f32.mrf.mxu0  ;;  %2169 = vrcp.f32 %v2645_v43  ;;  %v1149_v13 = vadd.f32 %v1148_v51, %v1147_v39  ;;  %vm976_vm2 = vweird.f32 %v2645_v43 }
  0xc0   : > { %v567_v50 = vpop.f32.mrf.mxu1  ;;  %v2654_v56 = vadd.f32 %v2546_v36, %v432_v49  ;;  %v1141_v16 = vrot.slane %v1140_v61, 1 }
  0xc1   : > { %v884_v57 = vadd.f32 %v883_v46, %v882_v44  ;;  %v2660_v59 = vadd.f32 %v2560_v42, %v567_v50  ;;  %v1150_v34 = vrot.slane %v1149_v13, 1  ;;  %v2693_v46 = vpop.f32.mrf.mxu3 }
  0xc2   : > { %606 = vst.msk [vmem:[#allocation2 + $0x28] sm:$0xff] %vm3949_vm1, %v2654_v56  ;;  %v856_v63 = vmul.f32 %v2591_v54, %v2654_v56  ;;  %v1123_v0 = vmul.f32 %v2617_v10, %v2654_v56  ;;  %v1142_v33 = vadd.f32 %v1141_v16, %v1140_v61  ;;  %v980_v61 = vand.u32 2147483647, %v2645_v43 }
  0xc3   : > { %v2074_v3 = vmul.f32 -1.442695, %v884_v57  ;;  %v1384_v6 = vmul.f32 %v2660_v59, %v2588_v53  ;;  %v1386_v11 = vmul.f32 %v2660_v59, %v2614_v9  ;;  %v1388_v12 = vmul.f32 %v2660_v59, %v2654_v56 }
  0xc4   : > { %v886_v7 = vsel %vm3949_vm1, %v856_v63, 0.0  ;;  %v1153_v8 = vsel %vm3949_vm1, %v1123_v0, 0.0  ;;  %v2081_v50 = vmul.f32 -1.442695, %v1142_v33  ;;  %v1151_v51 = vadd.f32 %v1150_v34, %v1149_v13 }
  0xc5   : > { %2171 = vpow2.f32 %v2074_v3  ;;  %v887_v15 = vadd.f32 %v886_v7, %v885_v4  ;;  %v1154_v17 = vadd.f32 %v1153_v8, %v1152_v5  ;;  %v1400_v18 = vsel %vm3949_vm1, %v1384_v6, 0.0  ;;  %v2686_v20 = vpop.eup %2169 }
  0xc6   : > { %v1409_v19 = vsel %vm3949_vm1, %v1386_v11, 0.0  ;;  %v1401_v23 = vadd.f32 %v1400_v18, %v1399_v14  ;;  %v1418_v27 = vsel %vm3949_vm1, %v1388_v12, 0.0  ;;  %v972_v32 = vmul.f32 %v2686_v20, %v2645_v43 }
  0xc7   : > { %v888_v22 = vrot.slane %v887_v15, 4  ;;  %v1155_v25 = vrot.slane %v1154_v17, 4  ;;  %v1410_v26 = vadd.f32 %v1409_v19, %v1408_v21  ;;  %v1419_v31 = vadd.f32 %v1418_v27, %v1417_v24  ;;  %v435_v24 = vpop.f32.mrf.mxu0 }
  0xc8   : > { %v1402_v29 = vrot.slane %v1401_v23, 4  ;;  %v973_v49 = vsub.f32 1.0, %v972_v32  ;;  %v982_v63 = vand.u32 2147483648, %v2645_v43  ;;  %v2082_v3 = vmul.f32 -1.442695, %v1151_v51  ;;  %v570_v12 = vpop.f32.mrf.mxu1 }
  0xc9   : > { %v889_v28 = vadd.f32 %v888_v22, %v887_v15  ;;  %v1156_v38 = vadd.f32 %v1155_v25, %v1154_v17  ;;  %v1411_v44 = vrot.slane %v1410_v26, 4  ;;  %v1420_v60 = vrot.slane %v1419_v31, 4  ;;  %v2705_v17 = vpop.f32.mrf.mxu3 }
  0xca   : > { %v1403_v39 = vadd.f32 %v1402_v29, %v1401_v23  ;;  %v974_v0 = vmul.f32 %v2686_v20, %v973_v49  ;;  %vm2699_vm4 = vcmp.eq.f32.partialorder %v980_v61, 8.507059e+37  ;;  %v983_v13 = vor.u32 1.1754944e-38, %v982_v63 }
  0xcb   : > { %v2172_v35 = vpop.eup %2171  ;;  %v890_v37 = vrot.slane %v889_v28, 2  ;;  %v1157_v52 = vrot.slane %v1156_v38, 2  ;;  %v1412_v57 = vadd.f32 %v1411_v44, %v1410_v26  ;;  %v1421_v11 = vadd.f32 %v1420_v60, %v1419_v31 }
  0xcc   : > { %v964_v45 = vadd.f32 1.0, %v2172_v35  ;;  %v1404_v55 = vrot.slane %v1403_v39, 2  ;;  %v975_v16 = vadd.f32 %v2686_v20, %v974_v0  ;;  %vm977_vm5 = vweird.f32 %v2686_v20 }
  0xcd   : > { %v891_v48 = vadd.f32 %v890_v37, %v889_v28  ;;  %v1158_v4 = vadd.f32 %v1157_v52, %v1156_v38  ;;  %v1413_v6 = vrot.slane %v1412_v57, 2  ;;  %v1422_v23 = vrot.slane %v1421_v11, 2  ;;  %vm2709_vm6 = vmor %vm976_vm2, %vm977_vm5 }
  0xce   : > { %2173 = vrcp.f32 %v964_v45  ;;  %v1405_v5 = vadd.f32 %v1404_v55, %v1403_v39  ;;  %v995_v26 = vand.u32 2147483647, %v964_v45  ;;  %v997_v27 = vand.u32 2147483648, %v964_v45 }
  0xcf   : > { %v892_v58 = vrot.slane %v891_v48, 1  ;;  %2175 = vpow2.f32 %v2081_v50  ;;  %v1159_v18 = vrot.slane %v1158_v4, 1  ;;  %v1414_v19 = vadd.f32 %v1413_v6, %v1412_v57 }
  0xd0   : > { %v1406_v15 = vrot.slane %v1405_v5, 1  ;;  %2177 = vpow2.f32 %v2082_v3  ;;  %v1423_v33 = vadd.f32 %v1422_v23, %v1421_v11  ;;  %v979_v35 = vsel %vm2709_vm6, %v2686_v20, %v975_v16 }
  0xd1   : > { %v893_v8 = vadd.f32 %v892_v58, %v891_v48  ;;  %v1415_v29 = vrot.slane %v1414_v19, 1  ;;  %v1160_v37 = vadd.f32 %v1159_v18, %v1158_v4  ;;  %v2717_v39 = vadd.f32 %v2546_v36, %v435_v24  ;;  %v594_v63 = vpop.f32.mrf.mxu3 }
  0xd2   : > { %v1407_v22 = vadd.f32 %v1406_v15, %v1405_v5  ;;  %vm991_vm8 = vweird.f32 %v964_v45  ;;  %v1424_v48 = vrot.slane %v1423_v33, 1  ;;  %vm996_vm10 = vcmp.eq.f32.partialorder %v995_v26, 8.507059e+37 }
  0xd3   : > { %v2075_v28 = vmul.f32 -1.442695, %v893_v8  ;;  %v1416_v38 = vadd.f32 %v1415_v29, %v1414_v19  ;;  %v998_v49 = vor.u32 1.1754944e-38, %v997_v27  ;;  %607 = vst.msk [vmem:[#allocation2 + $0x30] sm:$0xff] %vm3949_vm1, %v2717_v39  ;;  %v857_v55 = vmul.f32 %v2577_v47, %v2717_v39 }
  0xd4   : > { %v2174_v7 = vpop.eup %2173  ;;  %v2091_v34 = vmul.f32 -1.442695, %v1407_v22  ;;  %v1425_v52 = vadd.f32 %v1424_v48, %v1423_v33  ;;  %v2083_v58 = vmul.f32 -1.442695, %v1160_v37  ;;  %v2733_v0 = vadd.f32 %v2560_v42, %v2693_v46 }
  0xd5   : > { %v987_v14 = vmul.f32 %v2174_v7, %v964_v45  ;;  %v2176_v25 = vpop.eup %2175  ;;  %vm992_vm7 = vweird.f32 %v2174_v7  ;;  %v2092_v50 = vmul.f32 -1.442695, %v1416_v38  ;;  %v984_v45 = vsel %vm2699_vm4, %v983_v13, %v979_v35  ;;  %v456_v38 = vpop.f32.mrf.mxu2 }
  0xd6   : > { %v2719_v43 = vadd.f32 1.0, %v2176_v25  ;;  %vm993_vm9 = vmor %vm991_vm8, %vm992_vm7  ;;  %2179 = vpow2.f32 %v2091_v34  ;;  %v2178_v51 = vpop.eup %2177  ;;  %v2093_v61 = vmul.f32 -1.442695, %v1425_v52  ;;  %v2736_v3 = vadd.f32 %v2560_v42, %v594_v63 }
  0xd7   : > { %v988_v21 = vsub.f32 1.0, %v987_v14  ;;  %2181 = vpow2.f32 %v2075_v28  ;;  %v1395_v8 = vmul.f32 %v2733_v0, %v2669_v1  ;;  %v2747_v11 = vadd.f32 1.0, %v2178_v51  ;;  %v438_v51 = vpop.f32.mrf.mxu0 }
  0xd8   : > { %2183 = vpow2.f32 %v2092_v50  ;;  %v1660_v46 = vmul.f32 %v2736_v3, %v2669_v1  ;;  %v2756_v16 = vadd.f32 %v2560_v42, %v2705_v17  ;;  %v1124_v18 = vmul.f32 %v2607_v2, %v2717_v39 }
  0xd9   : > { %v989_v32 = vmul.f32 %v2174_v7, %v988_v21  ;;  %2185 = vrcp.f32 %v2719_v43  ;;  %v2762_v22 = vsel %vm3949_vm1, %v1395_v8, 0.0  ;;  %v1389_v24 = vmul.f32 %v2643_v40, %v2717_v39  ;;  %v597_v50 = vpop.f32.mrf.mxu3 }
  0xda   : > { %2187 = vpow2.f32 %v2083_v58  ;;  %v2765_v23 = vsel %vm3949_vm1, %v1660_v46, 0.0  ;;  %v2777_v2 = vadd.f32 %v2560_v42, %v570_v12  ;;  %v2784_v40 = vsel %vm3949_vm1, %v857_v55, 0.0 }
  0xdb   : > { %v990_v44 = vadd.f32 %v2174_v7, %v989_v32  ;;  %2189 = vpow2.f32 %v2093_v61  ;;  %v2790_v32 = vsel %vm3949_vm1, %v1124_v18, 0.0  ;;  %v2799_v37 = vsel %vm3949_vm1, %v1389_v24, 0.0 }
  0xdc   : > { %v2180_v47 = vpop.eup %2179  ;;  %v2825_v8 = vadd.f32 %v2560_v42, %v597_v50 }
  0xdd   : > { %v994_v20 = vsel %vm993_vm9, %v2174_v7, %v990_v44  ;;  %v2182_v4 = vpop.eup %2181  ;;  %v2738_v5 = vadd.f32 1.0, %v2180_v47 }
  0xde   : > { %v999_v57 = vsel %vm996_vm10, %v998_v49, %v994_v20  ;;  %v2184_v6 = vpop.eup %2183  ;;  %v2751_v14 = vadd.f32 1.0, %v2182_v4  ;;  %v2805_v49 = vmul.f32 %v2777_v2, %v2555_v41  ;;  %v573_v41 = vpop.f32.mrf.mxu1  ;;  %vm1243_vm10 = vweird.f32 %v2719_v43 }
  0xdf   : > { %v2728_v60 = vsel %vm3946_vm3, %v999_v57, %v984_v45  ;;  %v2740_v7 = vadd.f32 1.0, %v2184_v6  ;;  %2191 = vrcp.f32 %v2738_v5  ;;  %v2749_v13 = vpop.eup %2185  ;;  %v1512_v21 = vand.u32 2147483647, %v2738_v5 }
  0xe0   : > { %3956 = vst [vmem:[#allocation7_spill] sm:$0xff] %v2728_v60  ;;  %v2188_v15 = vpop.eup %2187  ;;  %v2771_v25 = vmul.f32 %v2749_v13, %v2719_v43  ;;  %v1514_v28 = vand.u32 2147483648, %v2738_v5  ;;  %vm1508_vm11 = vweird.f32 %v2738_v5  ;;  %v2811_v45 = vmul.f32 %v2777_v2, %v2600_v62 }
  0xe1   : > { %2193 = vrcp.f32 %v2740_v7  ;;  %v2190_v19 = vpop.eup %2189  ;;  %v2780_v27 = vadd.f32 1.0, %v2188_v15  ;;  %v1527_v31 = vand.u32 2147483647, %v2740_v7  ;;  %vm2793_vm12 = vcmp.eq.f32.partialorder %v1512_v21, 8.507059e+37 }
  0xe2   : > { %2195 = vrcp.f32 %v2747_v11  ;;  %v2774_v17 = vadd.f32 1.0, %v2190_v19  ;;  %v1529_v35 = vand.u32 2147483648, %v2740_v7  ;;  %vm1523_vm13 = vweird.f32 %v2740_v7 }
  0xe3   : > { %2197 = vrcp.f32 %v2751_v14  ;;  %v1515_v20 = vor.u32 1.1754944e-38, %v1514_v28  ;;  %vm2815_vm15 = vcmp.eq.f32.partialorder %v1527_v31, 8.507059e+37  ;;  %v2822_v6 = vadd.f32 %v2546_v36, %v456_v38 }
  0xe4   : > { %2199 = vrcp.f32 %v2774_v17  ;;  %v1542_v52 = vand.u32 2147483647, %v2774_v17  ;;  %v1544_v55 = vand.u32 2147483648, %v2774_v17  ;;  %v1530_v4 = vor.u32 1.1754944e-38, %v1529_v35 }
  0xe5   : > { %v2192_v26 = vpop.eup %2191  ;;  %v2828_v62 = vadd.f32 %v2546_v36, %v438_v51  ;;  %vm1538_vm4 = vweird.f32 %v2774_v17  ;;  %614 = vst.msk [vmem:[#allocation2 + $0x68] sm:$0xff] %vm3949_vm1, %v2822_v6  ;;  %v1396_v24 = vmul.f32 %v2756_v16, %v2822_v6  ;;  %v2844_v28 = vadd.f32 %v2560_v42, %v573_v41 }
  0xe6   : > { %v1504_v29 = vmul.f32 %v2192_v26, %v2738_v5  ;;  %vm1509_vm14 = vweird.f32 %v2192_v26  ;;  %vm2835_vm6 = vcmp.eq.f32.partialorder %v1542_v52, 8.507059e+37  ;;  %v1545_v21 = vor.u32 1.1754944e-38, %v1544_v55 }
  0xe7   : > { %v2194_v33 = vpop.eup %2193  ;;  %vm1510_vm5 = vmor %vm1508_vm11, %vm1509_vm14  ;;  %v1661_v5 = vmul.f32 %v2825_v8, %v2822_v6  ;;  %608 = vst.msk [vmem:[#allocation2 + $0x38] sm:$0xff] %vm3949_vm1, %v2828_v62  ;;  %v1454_v42 = vsel %vm3949_vm1, %v1396_v24, 0.0  ;;  %v1125_v51 = vmul.f32 %v2617_v10, %v2828_v62  ;;  %v1390_v10 = vmul.f32 %v2660_v59, %v2828_v62 }
  0xe8   : > { %v1505_v44 = vsub.f32 1.0, %v1504_v29  ;;  %v1519_v48 = vmul.f32 %v2194_v33, %v2740_v7  ;;  %v2813_v57 = vpop.eup %2195  ;;  %vm1524_vm2 = vweird.f32 %v2194_v33  ;;  %v1664_v19 = vsel %vm3949_vm1, %v2805_v49, 0.0 }
  0xe9   : > { %v2819_v47 = vpop.eup %2197  ;;  %vm1525_vm8 = vmor %vm1523_vm13, %vm1524_vm2  ;;  %v1719_v50 = vsel %vm3949_vm1, %v1661_v5, 0.0  ;;  %2201 = vrcp.f32 %v2780_v27  ;;  %vm1258_vm11 = vweird.f32 %v2747_v11  ;;  %vm1259_vm14 = vweird.f32 %v2813_v57 }
  0xea   : > { %v1506_v58 = vmul.f32 %v2192_v26, %v1505_v44  ;;  %v1520_v61 = vsub.f32 1.0, %v1519_v48  ;;  %v2200_v46 = vpop.eup %2199  ;;  %v1455_v48 = vadd.f32 %v1454_v42, %v2762_v22  ;;  %v1720_v7 = vadd.f32 %v1719_v50, %v2765_v23 }
  0xeb   : > { %v1534_v18 = vmul.f32 %v2200_v46, %v2774_v17  ;;  %vm1539_vm7 = vweird.f32 %v2200_v46  ;;  %v1162_v22 = vsel %vm3949_vm1, %v1125_v51, 0.0 }
  0xec   : > { %v1507_v12 = vadd.f32 %v2192_v26, %v1506_v58  ;;  %v1521_v15 = vmul.f32 %v2194_v33, %v1520_v61  ;;  %v1456_v58 = vrot.slane %v1455_v48, 4  ;;  %v1721_v61 = vrot.slane %v1720_v7, 4  ;;  %vm1540_vm9 = vmor %vm1538_vm4, %vm1539_vm7 }
  0xed   : > { %v1535_v38 = vsub.f32 1.0, %v1534_v18  ;;  %v1163_v41 = vadd.f32 %v1162_v22, %v2790_v32  ;;  %v1427_v32 = vsel %vm3949_vm1, %v1390_v10, 0.0  ;;  %v1655_v10 = vmul.f32 %v2844_v28, %v2828_v62  ;;  %vm2961_vm4 = vmor %vm1258_vm11, %vm1259_vm14 }
  0xee   : > { %v1511_v29 = vsel %vm1510_vm5, %v2192_v26, %v1507_v12  ;;  %v1522_v31 = vadd.f32 %v2194_v33, %v1521_v15  ;;  %v858_v26 = vmul.f32 %v2591_v54, %v2828_v62  ;;  %v1457_v23 = vadd.f32 %v1456_v58, %v1455_v48  ;;  %v441_v62 = vpop.f32.mrf.mxu0 }
  0xef   : > { %v1516_v35 = vsel %vm2793_vm12, %v1515_v20, %v1511_v29  ;;  %v1536_v20 = vmul.f32 %v2200_v46, %v1535_v38  ;;  %v1722_v15 = vadd.f32 %v1721_v61, %v1720_v7  ;;  %v1164_v18 = vrot.slane %v1163_v41, 4 }
  0xf0   : > { %v1526_v44 = vsel %vm1525_vm8, %v2194_v33, %v1522_v31  ;;  %v895_v52 = vsel %vm3949_vm1, %v858_v26, 0.0  ;;  %v1458_v24 = vrot.slane %v1457_v23, 2  ;;  %v1428_v17 = vadd.f32 %v1427_v32, %v2799_v37 }
  0xf1   : > { %v1531_v34 = vsel %vm2815_vm15, %v1530_v4, %v1526_v44  ;;  %v896_v54 = vadd.f32 %v895_v52, %v2784_v40  ;;  %v1537_v33 = vadd.f32 %v2200_v46, %v1536_v20  ;;  %v1649_v4 = vmul.f32 %v2844_v28, %v2588_v53 }
  0xf2   : > { %v1635_v55 = vsel %vm3946_vm3, %v1531_v34, %v1516_v35  ;;  %v1651_v40 = vmul.f32 %v2844_v28, %v2614_v9  ;;  %v1652_v53 = vmul.f32 %v2777_v2, %v2634_v30  ;;  %v1723_v5 = vrot.slane %v1722_v15, 2 }
  0xf3   : > { %v897_v63 = vrot.slane %v896_v54, 4  ;;  %v1541_v12 = vsel %vm1540_vm9, %v2200_v46, %v1537_v33  ;;  %v1653_v9 = vmul.f32 %v2844_v28, %v2654_v56  ;;  %v1459_v46 = vadd.f32 %v1458_v24, %v1457_v23 }
  0xf4   : > { %v1546_v59 = vsel %vm2835_vm6, %v1545_v21, %v1541_v12  ;;  %v1165_v38 = vadd.f32 %v1164_v18, %v1163_v41  ;;  %v1429_v42 = vrot.slane %v1428_v17, 4  ;;  %v1724_v21 = vadd.f32 %v1723_v5, %v1722_v15  ;;  %v2906_v15 = vpop.eup %2201 }
  0xf5   : > { %v898_v29 = vadd.f32 %v897_v63, %v896_v54  ;;  %v2884_v31 = vsel %vm3947_vm0, %v1546_v59, %v1635_v55  ;;  %v1665_v37 = vsel %vm3949_vm1, %v1649_v4, 0.0  ;;  %v1674_v26 = vsel %vm3949_vm1, %v1651_v40, 0.0 }
  0xf6   : > { %3963 = vst [vmem:[#allocation8_spill] sm:$0xff] %v2884_v31  ;;  %v1673_v44 = vsel %vm3949_vm1, %v2811_v45, 0.0  ;;  %v1460_v30 = vrot.slane %v1459_v46, 1  ;;  %v1430_v48 = vadd.f32 %v1429_v42, %v1428_v17  ;;  %v1666_v50 = vadd.f32 %v1665_v37, %v1664_v19 }
  0xf7   : > { %v899_v35 = vrot.slane %v898_v29, 2  ;;  %v1725_v56 = vrot.slane %v1724_v21, 1  ;;  %v1675_v51 = vadd.f32 %v1674_v26, %v1673_v44  ;;  %v1683_v34 = vsel %vm3949_vm1, %v1653_v9, 0.0  ;;  %v631_v26 = vld [vmem:[#allocation2 + $0x21] ss:$4 sm:$0xff] }
  0xf8   : > { %v1682_v20 = vsel %vm3949_vm1, %v1652_v53, 0.0  ;;  %v1166_v7 = vrot.slane %v1165_v38, 2  ;;  %v1667_v52 = vrot.slane %v1666_v50, 4  ;;  %v1461_v55 = vadd.f32 %v1460_v30, %v1459_v46  ;;  %v459_v53 = vpop.f32.mrf.mxu2  ;;  %v619_v44 = vld [vmem:[#allocation2 + $0x20] ss:$4 sm:$0xff]  ;;  %2050 = vmatmul.msk.f32.gmra.mxu2 %vm3949_vm1, %v631_v26 }
  0xf9   : > { %v900_v49 = vadd.f32 %v899_v35, %v898_v29  ;;  %v1431_v58 = vrot.slane %v1430_v48, 2  ;;  %v1676_v54 = vrot.slane %v1675_v51, 4  ;;  %v1684_v22 = vadd.f32 %v1683_v34, %v1682_v20  ;;  %2054 = vmatmul.msk.f32.gmra.mxu3 %vm3949_vm1, %v619_v44 }
  0xfa   : > { %v1254_v45 = vmul.f32 %v2813_v57, %v2747_v11  ;;  %v1654_v33 = vmul.f32 %v2777_v2, %v2717_v39  ;;  %v1726_v61 = vadd.f32 %v1725_v56, %v1724_v21  ;;  %v1668_v41 = vadd.f32 %v1667_v52, %v1666_v50 }
  0xfb   : > { %v1677_v23 = vadd.f32 %v1676_v54, %v1675_v51  ;;  %v1685_v63 = vrot.slane %v1684_v22, 4  ;;  %v1247_v4 = vand.u32 2147483647, %v2719_v43  ;;  %v1167_v40 = vadd.f32 %v1166_v7, %v1165_v38 }
  0xfc   : > { %v1669_v12 = vrot.slane %v1668_v41, 2  ;;  %v1240_v18 = vsub.f32 1.0, %v2771_v25  ;;  %v2097_v32 = vmul.f32 -1.442695, %v1461_v55  ;;  %v901_v59 = vrot.slane %v900_v49, 1 }
  0xfd   : > { %v1432_v24 = vadd.f32 %v1431_v58, %v1430_v48  ;;  %v1255_v29 = vsub.f32 1.0, %v1254_v45  ;;  %v1691_v39 = vsel %vm3949_vm1, %v1654_v33, 0.0  ;;  %v2107_v2 = vmul.f32 -1.442695, %v1726_v61 }
  0xfe   : > { %v1686_v17 = vadd.f32 %v1685_v63, %v1684_v22  ;;  %v1670_v28 = vadd.f32 %v1669_v12, %v1668_v41  ;;  %v1678_v5 = vrot.slane %v1677_v23, 2  ;;  %v1692_v9 = vsel %vm3949_vm1, %v1655_v10, 0.0 }
  0xff   : > { %v2912_v46 = vadd.f32 %v2546_v36, %v459_v53  ;;  %v1002_v25 = vmul.f32 %v2819_v47, %v2751_v14  ;;  %v1168_v35 = vrot.slane %v1167_v40, 1  ;;  %v1693_v42 = vadd.f32 %v1692_v9, %v1691_v39 }
 0x100   : > { %v1687_v38 = vrot.slane %v1686_v17, 2  ;;  %2203 = vpow2.f32 %v2097_v32  ;;  %v902_v19 = vadd.f32 %v901_v59, %v900_v49  ;;  %v1433_v21 = vrot.slane %v1432_v24, 1 }
 0x101   : > { %615 = vst.msk [vmem:[#allocation2 + $0x70] sm:$0xff] %vm3949_vm1, %v2912_v46  ;;  %v2920_v37 = vadd.f32 %v2546_v36, %v441_v62  ;;  %v1241_v30 = vmul.f32 %v2749_v13, %v1240_v18  ;;  %v1249_v48 = vand.u32 2147483648, %v2719_v43  ;;  %v1269_v50 = vmul.f32 %v2906_v15, %v2780_v27 }
 0x102   : > { %v1694_v56 = vrot.slane %v1693_v42, 4  ;;  %2205 = vpow2.f32 %v2107_v2  ;;  %v1671_v51 = vrot.slane %v1670_v28, 1  ;;  %v1679_v34 = vadd.f32 %v1678_v5, %v1677_v23 }
 0x103   : > { %v1688_v20 = vadd.f32 %v1687_v38, %v1686_v17  ;;  %609 = vst.msk [vmem:[#allocation2 + $0x40] sm:$0xff] %vm3949_vm1, %v2920_v37  ;;  %v1256_v36 = vmul.f32 %v2813_v57, %v1255_v29  ;;  %v1169_v49 = vadd.f32 %v1168_v35, %v1167_v40  ;;  %v1262_v52 = vand.u32 2147483647, %v2747_v11 }
 0x104   : > { %v1695_v7 = vadd.f32 %v1694_v56, %v1693_v42  ;;  %v1003_v55 = vsub.f32 1.0, %v1002_v25  ;;  %v2076_v58 = vmul.f32 -1.442695, %v902_v19  ;;  %v1434_v54 = vadd.f32 %v1433_v21, %v1432_v24 }
 0x105   : > { %v1242_v22 = vadd.f32 %v2749_v13, %v1241_v30  ;;  %vm1244_vm12 = vweird.f32 %v2749_v13  ;;  %v1264_v45 = vand.u32 2147483648, %v2747_v11  ;;  %v1270_v33 = vsub.f32 1.0, %v1269_v50 }
 0x106   : > { %v2204_v61 = vpop.eup %2203  ;;  %v1250_v41 = vor.u32 1.1754944e-38, %v1249_v48  ;;  %v1672_v10 = vadd.f32 %v1671_v51, %v1670_v28  ;;  %v1680_v23 = vrot.slane %v1679_v34, 1  ;;  %v1689_v63 = vrot.slane %v1688_v20, 1  ;;  %vm2944_vm15 = vmor %vm1243_vm10, %vm1244_vm12 }
 0x107   : > { %vm2936_vm13 = vcmp.eq.f32.partialorder %v1247_v4, 8.507059e+37  ;;  %v1257_v12 = vadd.f32 %v2813_v57, %v1256_v36  ;;  %v2084_v18 = vmul.f32 -1.442695, %v1169_v49  ;;  %v1696_v32 = vrot.slane %v1695_v7, 2 }
 0x108   : > { %v2206_v59 = vpop.eup %2205  ;;  %vm2948_vm2 = vcmp.eq.f32.partialorder %v1262_v52, 8.507059e+37  ;;  %v1004_v4 = vmul.f32 %v2819_v47, %v1003_v55  ;;  %2207 = vpow2.f32 %v2076_v58  ;;  %v2094_v39 = vmul.f32 -1.442695, %v1434_v54 }
 0x109   : > { %v1246_v2 = vsel %vm2944_vm15, %v2749_v13, %v1242_v22  ;;  %v1265_v17 = vor.u32 1.1754944e-38, %v1264_v45  ;;  %v1271_v53 = vmul.f32 %v2906_v15, %v1270_v33  ;;  %v2957_v43 = vadd.f32 1.0, %v2204_v61 }
 0x10a   : > { %v1681_v28 = vadd.f32 %v1680_v23, %v1679_v34  ;;  %v1690_v5 = vadd.f32 %v1689_v63, %v1688_v20  ;;  %v1697_v9 = vadd.f32 %v1696_v32, %v1695_v7  ;;  %v2101_v25 = vmul.f32 -1.442695, %v1672_v10 }
 0x10b   : > { %v1261_v35 = vsel %vm2961_vm4, %v2813_v57, %v1257_v12  ;;  %vm1006_vm5 = vweird.f32 %v2751_v14  ;;  %v2969_v13 = vadd.f32 1.0, %v2206_v59  ;;  %2209 = vpow2.f32 %v2084_v18 }
 0x10c   : > { %v1005_v38 = vadd.f32 %v2819_v47, %v1004_v4  ;;  %vm1007_vm6 = vweird.f32 %v2819_v47  ;;  %v1012_v11 = vand.u32 2147483648, %v2751_v14  ;;  %2211 = vpow2.f32 %v2094_v39 }
 0x10d   : > { %v1272_v42 = vadd.f32 %v2906_v15, %v1271_v53  ;;  %vm1274_vm7 = vweird.f32 %v2906_v15  ;;  %2213 = vrcp.f32 %v2957_v43  ;;  %v1698_v19 = vrot.slane %v1697_v9, 1  ;;  %vm2980_vm8 = vmor %vm1006_vm5, %vm1007_vm6 }
 0x10e   : > { %v2208_v57 = vpop.eup %2207  ;;  %v1279_v21 = vand.u32 2147483648, %v2780_v27  ;;  %2215 = vpow2.f32 %v2101_v25  ;;  %v2102_v26 = vmul.f32 -1.442695, %v1681_v28  ;;  %v2103_v44 = vmul.f32 -1.442695, %v1690_v5  ;;  %v576_v28 = vpop.f32.mrf.mxu1 }
 0x10f   : > { %v1010_v48 = vand.u32 2147483647, %v2751_v14  ;;  %vm1273_vm9 = vweird.f32 %v2780_v27  ;;  %v1277_v50 = vand.u32 2147483647, %v2780_v27  ;;  %2217 = vrcp.f32 %v2969_v13  ;;  %v3053_v5 = vpop.f32.mrf.mxu0 }
 0x110   : > { %v1251_v56 = vsel %vm2936_vm13, %v1250_v41, %v1246_v2  ;;  %v1266_v51 = vsel %vm2948_vm2, %v1265_v17, %v1261_v35  ;;  %v1009_v34 = vsel %vm2980_vm8, %v2819_v47, %v1005_v38  ;;  %v1013_v20 = vor.u32 1.1754944e-38, %v1012_v11  ;;  %vm2997_vm10 = vmor %vm1273_vm9, %vm1274_vm7 }
 0x111   : > { %v2210_v27 = vpop.eup %2209  ;;  %v1276_v36 = vsel %vm2997_vm10, %v2906_v15, %v1272_v42  ;;  %v3004_v49 = vadd.f32 1.0, %v2208_v57  ;;  %v1699_v7 = vadd.f32 %v1698_v19, %v1697_v9  ;;  %2219 = vpow2.f32 %v2102_v26 }
 0x112   : > { %v2212_v52 = vpop.eup %2211  ;;  %v1280_v55 = vor.u32 1.1754944e-38, %v1279_v21  ;;  %2221 = vpow2.f32 %v2103_v44  ;;  %v1397_v47 = vmul.f32 %v2733_v0, %v2912_v46  ;;  %v1662_v58 = vmul.f32 %v2736_v3, %v2912_v46 }
 0x113   : > { %v3010_v54 = vpop.eup %2213  ;;  %vm1011_vm11 = vcmp.eq.f32.partialorder %v1010_v48, 8.507059e+37  ;;  %vm1278_vm12 = vcmp.eq.f32.partialorder %v1277_v50, 8.507059e+37  ;;  %v1604_v22 = vand.u32 2147483648, %v2957_v43  ;;  %v3014_v45 = vsel %vm3946_vm3, %v1266_v51, %v1251_v56 }
 0x114   : > { %v2216_v15 = vpop.eup %2215  ;;  %3976 = vst [vmem:[#allocation9_spill] sm:$0xff] %v3014_v45  ;;  %v3016_v33 = vsel %vm1011_vm11, %v1013_v20, %v1009_v34  ;;  %v3018_v61 = vsel %vm1278_vm12, %v1280_v55, %v1276_v36  ;;  %v2104_v41 = vmul.f32 -1.442695, %v1699_v7  ;;  %v1869_v23 = vand.u32 2147483648, %v2969_v13 }
 0x115   : > { %3977 = vst [vmem:[#allocation10_spill] sm:$0xff] %v3016_v33  ;;  %v3020_v10 = vpop.eup %2217  ;;  %2223 = vrcp.f32 %v3004_v49  ;;  %v3024_v63 = vadd.f32 1.0, %v2210_v27  ;;  %v3026_v40 = vadd.f32 1.0, %v2216_v15  ;;  %v3030_v18 = vsel %vm3949_vm1, %v1397_v47, 0.0 }
 0x116   : > { %3978 = vst [vmem:[#allocation11_spill] sm:$0xff] %v3018_v61  ;;  %2225 = vpow2.f32 %v2104_v41  ;;  %v3033_v32 = vsel %vm3949_vm1, %v1662_v58, 0.0  ;;  %v3035_v24 = vor.u32 1.1754944e-38, %v1604_v22  ;;  %v3038_v4 = vadd.f32 1.0, %v2212_v52  ;;  %v3095_v52 = vld [vmem:[%s3942_s6] ss:$0 sm:$0xff]  ;;  %v579_v38 = vpop.f32.mrf.mxu1 }
 0x117   : > { %v2220_v59 = vpop.eup %2219  ;;  %2227 = vrcp.f32 %v3026_v40  ;;  %v3043_v2 = vmul.f32 %v3010_v54, %v2957_v43  ;;  %v3047_v17 = vmul.f32 %v3020_v10, %v2969_v13  ;;  %v1391_v62 = vmul.f32 %v2733_v0, %v2920_v37 }
 0x118   : > { %v2222_v39 = vpop.eup %2221  ;;  %v3049_v53 = vadd.f32 1.0, %v2220_v59  ;;  %v3055_v9 = vor.u32 1.1754944e-38, %v1869_v23  ;;  %2229 = vrcp.f32 %v3024_v63  ;;  %v1777_v11 = vand.u32 2147483647, %v3026_v40 }
 0x119   : > { %v3059_v35 = vadd.f32 1.0, %v2222_v39  ;;  %v1779_v42 = vand.u32 2147483648, %v3026_v40  ;;  %v1656_v26 = vmul.f32 %v2736_v3, %v2920_v37  ;;  %v3076_v50 = vsel %vm3949_vm1, %v1391_v62, 0.0 }
 0x11a   : > { %2231 = vrcp.f32 %v3049_v53  ;;  %v1794_v21 = vand.u32 2147483648, %v3049_v53  ;;  %vm1773_vm13 = vweird.f32 %v3026_v40  ;;  %v1792_v34 = vand.u32 2147483647, %v3049_v53 }
 0x11b   : > { %v3065_v19 = vpop.eup %2223  ;;  %2233 = vrcp.f32 %v3059_v35  ;;  %v1809_v20 = vand.u32 2147483648, %v3059_v35  ;;  %vm3087_vm14 = vcmp.eq.f32.partialorder %v1777_v11, 8.507059e+37  ;;  %v1780_v36 = vor.u32 1.1754944e-38, %v1779_v42 }
 0x11c   : > { %v2226_v44 = vpop.eup %2225  ;;  %2235 = vrcp.f32 %v3038_v4  ;;  %v1807_v7 = vand.u32 2147483647, %v3059_v35  ;;  %v3098_v55 = vadd.f32 %v3095_v52, %v576_v28  ;;  %vm1788_vm2 = vweird.f32 %v3049_v53 }
 0x11d   : > { %v3078_v56 = vpop.eup %2227  ;;  %v3080_v51 = vadd.f32 1.0, %v2226_v44  ;;  %v3104_v58 = vor.u32 1.1754944e-38, %v1794_v21  ;;  %v3108_v22 = vsel %vm3949_vm1, %v1656_v26, 0.0  ;;  %vm1803_vm4 = vweird.f32 %v3059_v35  ;;  %v462_v44 = vpop.f32.mrf.mxu2 }
 0x11e   : > { %v1769_v14 = vmul.f32 %v3078_v56, %v3026_v40  ;;  %v3100_v47 = vpop.eup %2229  ;;  %vm1774_vm15 = vweird.f32 %v3078_v56  ;;  %v859_v59 = vmul.f32 %v3098_v55, %v2920_v37  ;;  %v863_v39 = vmul.f32 %v3098_v55, %v2669_v1 }
 0x11f   : > { %2237 = vrcp.f32 %v3080_v51  ;;  %v1824_v23 = vand.u32 2147483648, %v3080_v51  ;;  %vm3117_vm5 = vcmp.eq.f32.partialorder %v1792_v34, 8.507059e+37  ;;  %v1810_v42 = vor.u32 1.1754944e-38, %v1809_v20  ;;  %v447_v20 = vpop.f32.mrf.mxu0  ;;  %vm1775_vm10 = vmor %vm1773_vm13, %vm1774_vm15 }
 0x120   : > { %v2232_v15 = vpop.eup %2231  ;;  %v1770_v41 = vsub.f32 1.0, %v1769_v14  ;;  %v1822_v21 = vand.u32 2147483647, %v3080_v51  ;;  %v865_v26 = vmul.f32 %v3098_v55, %v2912_v46  ;;  %vm3128_vm8 = vcmp.eq.f32.partialorder %v1807_v7, 8.507059e+37  ;;  %v3143_v7 = vld [vmem:[%s3941_s5] ss:$0 sm:$0xff] }
 0x121   : > { %v2234_v62 = vpop.eup %2233  ;;  %v1784_v28 = vmul.f32 %v2232_v15, %v3049_v53  ;;  %vm1789_vm6 = vweird.f32 %v2232_v15  ;;  %v1825_v12 = vor.u32 1.1754944e-38, %v1824_v23  ;;  %v3133_v48 = vsel %vm3949_vm1, %v859_v59, 0.0 }
 0x122   : > { %v3124_v14 = vpop.eup %2235  ;;  %v1771_v57 = vmul.f32 %v3078_v56, %v1770_v41  ;;  %v1799_v25 = vmul.f32 %v2234_v62, %v3059_v35  ;;  %vm1804_vm7 = vweird.f32 %v2234_v62  ;;  %v3136_v30 = vsel %vm3949_vm1, %v863_v39, 0.0  ;;  %vm1790_vm15 = vmor %vm1788_vm2, %vm1789_vm6 }
 0x123   : > { %v1785_v29 = vsub.f32 1.0, %v1784_v28  ;;  %vm1818_vm9 = vweird.f32 %v3080_v51  ;;  %v3146_v61 = vadd.f32 %v3143_v7, %v462_v44  ;;  %v3150_v23 = vadd.f32 %v3143_v7, %v3053_v5 }
 0x124   : > { %v1772_v41 = vadd.f32 %v3078_v56, %v1771_v57  ;;  %v1800_v31 = vsub.f32 1.0, %v1799_v25  ;;  %v930_v57 = vsel %vm3949_vm1, %v865_v26, 0.0  ;;  %v3158_v39 = vadd.f32 %v3095_v52, %v579_v38 }
 0x125   : > { %3985 = vst [vmem:[#allocation12_spill] sm:$0xff] %v3150_v23  ;;  %v2238_v59 = vpop.eup %2237  ;;  %v1786_v25 = vmul.f32 %v2232_v15, %v1785_v29  ;;  %v3161_v28 = vadd.f32 %v3143_v7, %v447_v20  ;;  %vm3165_vm12 = vcmp.eq.f32.partialorder %v1822_v21, 8.507059e+37  ;;  %vm3948_vm13 = vcmask 1043459  }
 0x126   : > { %v1776_v44 = vsel %vm1775_vm10, %v3078_v56, %v1772_v41  ;;  %v1801_v45 = vmul.f32 %v2234_v62, %v1800_v31  ;;  %v1814_v5 = vmul.f32 %v2238_v59, %v3080_v51  ;;  %vm1819_vm11 = vweird.f32 %v2238_v59  ;;  %616 = vst.msk [vmem:[#allocation2 + $0x78] sm:$0xff] %vm3949_vm1, %v3146_v61 }
 0x127   : > { %v1781_v40 = vsel %vm3087_vm14, %v1780_v36, %v1776_v44  ;;  %v1787_v29 = vadd.f32 %v2232_v15, %v1786_v25  ;;  %v1398_v38 = vmul.f32 %v2756_v16, %v3146_v61  ;;  %v1663_v31 = vmul.f32 %v2825_v8, %v3146_v61  ;;  %610 = vst.msk [vmem:[#allocation2 + $0x48] sm:$0xff] %vm3949_vm1, %v3150_v23  ;;  %vm1805_vm14 = vmor %vm1803_vm4, %vm1804_vm7 }
 0x128   : > { %v1802_v56 = vadd.f32 %v2234_v62, %v1801_v45  ;;  %v1815_v21 = vsub.f32 1.0, %v1814_v5  ;;  %v1392_v27 = vmul.f32 %v2756_v16, %v3150_v23  ;;  %v1657_v36 = vmul.f32 %v2825_v8, %v3150_v23  ;;  %611 = vst.msk [vmem:[#allocation2 + $0x50] sm:$0xff] %vm3949_vm1, %v3161_v28  ;;  %vm1820_vm2 = vmor %vm1818_vm9, %vm1819_vm11 }
 0x129   : > { %v1791_v26 = vsel %vm1790_vm15, %v2232_v15, %v1787_v29  ;;  %v1463_v20 = vsel %vm3949_vm1, %v1398_v38, 0.0  ;;  %v1728_v53 = vsel %vm3949_vm1, %v1663_v31, 0.0  ;;  %v860_v45 = vmul.f32 %v3158_v39, %v3150_v23 }
 0x12a   : > { %v1796_v41 = vsel %vm3117_vm5, %v3104_v58, %v1791_v26  ;;  %v1806_v25 = vsel %vm1805_vm14, %v2234_v62, %v1802_v56  ;;  %v1816_v44 = vmul.f32 %v2238_v59, %v1815_v21  ;;  %v1464_v5 = vadd.f32 %v1463_v20, %v3030_v18 }
 0x12b   : > { %v1811_v15 = vsel %vm3128_vm8, %v1810_v42, %v1806_v25  ;;  %v1900_v35 = vsel %vm3946_vm3, %v1796_v41, %v1781_v40  ;;  %v1729_v29 = vadd.f32 %v1728_v53, %v3033_v32  ;;  %v1436_v38 = vsel %vm3949_vm1, %v1392_v27, 0.0 }
 0x12c   : > { %v1817_v31 = vadd.f32 %v2238_v59, %v1816_v44  ;;  %v1901_v60 = vsel %vm3947_vm0, %v1811_v15, %v1900_v35  ;;  %v1465_v23 = vrot.slane %v1464_v5, 4  ;;  %v1437_v11 = vadd.f32 %v1436_v38, %v3076_v50 }
 0x12d   : > { %v1730_v18 = vrot.slane %v1729_v29, 4  ;;  %v1701_v58 = vsel %vm3949_vm1, %v1657_v36, 0.0  ;;  %v864_v62 = vmul.f32 %v3158_v39, %v2822_v6  ;;  %v866_v32 = vmul.f32 %v3158_v39, %v3146_v61 }
 0x12e   : > { %v1821_v42 = vsel %vm1820_vm2, %v2238_v59, %v1817_v31  ;;  %v1466_v34 = vadd.f32 %v1465_v23, %v1464_v5  ;;  %v1438_v40 = vrot.slane %v1437_v11, 4  ;;  %v1702_v56 = vadd.f32 %v1701_v58, %v3108_v22 }
 0x12f   : > { %v1826_v50 = vsel %vm3165_vm12, %v1825_v12, %v1821_v42  ;;  %v1731_v21 = vadd.f32 %v1730_v18, %v1729_v29  ;;  %v904_v51 = vsel %vm3949_vm1, %v860_v45, 0.0  ;;  %v922_v27 = vsel %vm3949_vm1, %v864_v62, 0.0 }
 0x130   : > { %v3220_v36 = vsel %vm3948_vm13, %v1826_v50, %v1901_v60  ;;  %v1467_v26 = vrot.slane %v1466_v34, 2  ;;  %v1439_v20 = vadd.f32 %v1438_v40, %v1437_v11  ;;  %v1703_v53 = vrot.slane %v1702_v56, 4  ;;  %v2060_v50 = vld [vmem:[%s3940_s4 + $0x58] sm:$0xff] }
 0x131   : > { %v1732_v41 = vrot.slane %v1731_v21, 2  ;;  %v905_v23 = vadd.f32 %v904_v51, %v3133_v48  ;;  %v923_v59 = vadd.f32 %v922_v27, %v3136_v30  ;;  %v931_v22 = vsel %vm3949_vm1, %v866_v32, 0.0  ;;  %760 = vmatpush.msra.mxu2 %v2060_v50 }
 0x132   : > { %v1468_v33 = vadd.f32 %v1467_v26, %v1466_v34  ;;  %v1440_v12 = vrot.slane %v1439_v20, 2  ;;  %v1704_v25 = vadd.f32 %v1703_v53, %v1702_v56  ;;  %v932_v44 = vadd.f32 %v931_v22, %v930_v57 }
 0x133   : > { %v3988_v45 = vsub.f32 1.0, %v3043_v2  ;;  %v1733_v60 = vadd.f32 %v1732_v41, %v1731_v21  ;;  %v906_v15 = vrot.slane %v905_v23, 4  ;;  %v924_v35 = vrot.slane %v923_v59, 4  ;;  %v2068_v21 = vld [vmem:[%s3940_s4 + $0x78] sm:$0xff] }
 0x134   : > { %v1469_v29 = vrot.slane %v1468_v33, 1  ;;  %v1441_v38 = vadd.f32 %v1440_v12, %v1439_v20  ;;  %v1705_v31 = vrot.slane %v1704_v25, 2  ;;  %v933_v48 = vrot.slane %v932_v44, 4  ;;  %818 = vmatpush.msra.mxu3 %v2068_v21 }
 0x135   : > { %v3228_v5 = vmul.f32 %v3010_v54, %v3988_v45  ;;  %v1017_v30 = vmul.f32 %v3065_v19, %v3004_v49  ;;  %v1734_v11 = vrot.slane %v1733_v60, 1  ;;  %v907_v18 = vadd.f32 %v906_v15, %v905_v23 }
 0x136   : > { %v925_v58 = vadd.f32 %v924_v35, %v923_v59  ;;  %vm1598_vm4 = vweird.f32 %v2957_v43  ;;  %v1470_v57 = vadd.f32 %v1469_v29, %v1468_v33  ;;  %v1442_v2 = vrot.slane %v1441_v38, 1 }
 0x137   : > { %v1706_v62 = vadd.f32 %v1705_v31, %v1704_v25  ;;  %v934_v32 = vadd.f32 %v933_v48, %v932_v44  ;;  %vm1863_vm5 = vweird.f32 %v2969_v13  ;;  %v1284_v42 = vmul.f32 %v3100_v47, %v3024_v63 }
 0x138   : > { %v1735_v34 = vadd.f32 %v1734_v11, %v1733_v60  ;;  %v908_v40 = vrot.slane %v907_v18, 2  ;;  %v926_v56 = vrot.slane %v925_v58, 2  ;;  %v2098_v51 = vmul.f32 -1.442695, %v1470_v57  ;;  %v450_v57 = vpop.f32.mrf.mxu0 }
 0x139   : > { %v1443_v27 = vadd.f32 %v1442_v2, %v1441_v38  ;;  %v1707_v26 = vrot.slane %v1706_v62, 1  ;;  %v935_v20 = vrot.slane %v934_v32, 2  ;;  %v1549_v53 = vmul.f32 %v3124_v14, %v3038_v4 }
 0x13a   : > { %v2108_v41 = vmul.f32 -1.442695, %v1735_v34  ;;  %v909_v23 = vadd.f32 %v908_v40, %v907_v18  ;;  %v927_v59 = vadd.f32 %v926_v56, %v925_v58  ;;  %2239 = vpow2.f32 %v2098_v51 }
 0x13b   : > { %v2095_v22 = vmul.f32 -1.442695, %v1443_v27  ;;  %v1708_v33 = vadd.f32 %v1707_v26, %v1706_v62  ;;  %v936_v12 = vadd.f32 %v935_v20, %v934_v32  ;;  %v3989_v25 = vsub.f32 1.0, %v3047_v17 }
 0x13c   : > { %2241 = vpow2.f32 %v2108_v41  ;;  %v910_v45 = vrot.slane %v909_v23, 1  ;;  %v928_v60 = vrot.slane %v927_v59, 1  ;;  %v1018_v15 = vsub.f32 1.0, %v1017_v30 }
 0x13d   : > { %v1861_v44 = vmul.f32 %v3020_v10, %v3989_v25  ;;  %2243 = vpow2.f32 %v2095_v22  ;;  %v2105_v35 = vmul.f32 -1.442695, %v1708_v33  ;;  %v937_v29 = vrot.slane %v936_v12, 1 }
 0x13e   : > { %v3990_v38 = vand.u32 2147483647, %v2957_v43  ;;  %v3993_v48 = vand.u32 2147483647, %v2969_v13  ;;  %vm1021_vm8 = vweird.f32 %v3004_v49  ;;  %v1285_v17 = vsub.f32 1.0, %v1284_v42 }
 0x13f   : > { %v1550_v18 = vsub.f32 1.0, %v1549_v53  ;;  %v911_v30 = vadd.f32 %v910_v45, %v909_v23  ;;  %v929_v58 = vadd.f32 %v928_v60, %v927_v59  ;;  %vm1599_vm9 = vweird.f32 %v3010_v54  ;;  %v582_v45 = vpop.f32.mrf.mxu1 }
 0x140   : > { %vm3249_vm6 = vcmp.eq.f32.partialorder %v3990_v38, 8.507059e+37  ;;  %vm3255_vm7 = vcmp.eq.f32.partialorder %v3993_v48, 8.507059e+37  ;;  %vm1288_vm10 = vweird.f32 %v3024_v63  ;;  %v1294_v2 = vand.u32 2147483648, %v3024_v63  ;;  %v2240_v56 = vpop.eup %2239  ;;  %vm3279_vm12 = vmor %vm1598_vm4, %vm1599_vm9 }
 0x141   : > { %2245 = vpow2.f32 %v2105_v35  ;;  %v938_v62 = vadd.f32 %v937_v29, %v936_v12  ;;  %vm1864_vm11 = vweird.f32 %v3020_v10  ;;  %v3996_v32 = vand.u32 2147483648, %v3004_v49 }
 0x142   : > { %v2077_v40 = vmul.f32 -1.442695, %v911_v30  ;;  %v2079_v42 = vmul.f32 -1.442695, %v929_v58  ;;  %v1597_v50 = vadd.f32 %v3010_v54, %v3228_v5  ;;  %v1862_v21 = vadd.f32 %v3020_v10, %v1861_v44  ;;  %v2242_v26 = vpop.eup %2241  ;;  %vm3291_vm15 = vmor %vm1863_vm5, %vm1864_vm11 }
 0x143   : > { %v3266_v34 = vor.u32 1.1754944e-38, %v3996_v32  ;;  %v1019_v51 = vmul.f32 %v3065_v19, %v1018_v15  ;;  %v3273_v27 = vadd.f32 %v3143_v7, %v450_v57  ;;  %v1286_v53 = vmul.f32 %v3100_v47, %v1285_v17  ;;  %v2244_v23 = vpop.eup %2243 }
 0x144   : > { %v1551_v5 = vmul.f32 %v3124_v14, %v1550_v18  ;;  %v3285_v41 = vadd.f32 1.0, %v2240_v56  ;;  %2247 = vpow2.f32 %v2077_v40  ;;  %v4001_v43 = vand.u32 2147483647, %v3004_v49 }
 0x145   : > { %v1557_v22 = vand.u32 2147483647, %v3038_v4  ;;  %v3302_v33 = vadd.f32 1.0, %v2242_v26  ;;  %2249 = vpow2.f32 %v2079_v42  ;;  %v2080_v12 = vmul.f32 -1.442695, %v938_v62  ;;  %612 = vst.msk [vmem:[#allocation2 + $0x58] sm:$0xff] %vm3949_vm1, %v3273_v27 }
 0x146   : > { %vm3297_vm14 = vcmp.eq.f32.partialorder %v4001_v43, 8.507059e+37  ;;  %vm1022_vm2 = vweird.f32 %v3065_v19  ;;  %vm1289_vm4 = vweird.f32 %v3100_v47  ;;  %v4004_v13 = vand.u32 2147483647, %v3024_v63 }
 0x147   : > { %v1559_v44 = vand.u32 2147483648, %v3038_v4  ;;  %2251 = vrcp.f32 %v3285_v41  ;;  %v2246_v60 = vpop.eup %2245  ;;  %v1601_v15 = vsel %vm3279_vm12, %v3010_v54, %v1597_v50  ;;  %v1020_v35 = vadd.f32 %v3065_v19, %v1019_v51  ;;  %vm3333_vm11 = vmor %vm1021_vm8, %vm1022_vm2 }
 0x148   : > { %vm3310_vm5 = vcmp.eq.f32.partialorder %v4004_v13, 8.507059e+37  ;;  %vm1554_vm9 = vweird.f32 %v3124_v14  ;;  %2253 = vrcp.f32 %v3302_v33  ;;  %v1866_v29 = vsel %vm3291_vm15, %v3020_v10, %v1862_v21  ;;  %vm3344_vm12 = vmor %vm1288_vm10, %vm1289_vm4 }
 0x149   : > { %v1287_v38 = vadd.f32 %v3100_v47, %v1286_v53  ;;  %v1552_v48 = vadd.f32 %v3124_v14, %v1551_v5  ;;  %v3327_v17 = vadd.f32 1.0, %v2244_v23  ;;  %v1295_v18 = vor.u32 1.1754944e-38, %v1294_v2 }
 0x14a   : > { %v3337_v30 = vadd.f32 1.0, %v2246_v60  ;;  %2255 = vpow2.f32 %v2080_v12  ;;  %v583_v10 = vadd.f32 %v3095_v52, %v582_v45  ;;  %v2248_v58 = vpop.eup %2247  ;;  %vm1553_vm8 = vweird.f32 %v3038_v4 }
 0x14b   : > { %vm3349_vm15 = vcmp.eq.f32.partialorder %v1557_v22, 8.507059e+37  ;;  %v1560_v2 = vor.u32 1.1754944e-38, %v1559_v44  ;;  %2257 = vrcp.f32 %v3327_v17  ;;  %v2250_v62 = vpop.eup %2249  ;;  %v3357_v32 = vsel %vm3249_vm6, %v3035_v24, %v1601_v15  ;;  %vm3369_vm10 = vmor %vm1553_vm8, %vm1554_vm9 }
 0x14c   : > { %v3362_v63 = vsel %vm3255_vm7, %v3055_v9, %v1866_v29  ;;  %v1024_v4 = vsel %vm3333_vm11, %v3065_v19, %v1020_v35  ;;  %v861_v31 = vmul.f32 %v3098_v55, %v3161_v28  ;;  %v1291_v9 = vsel %vm3344_vm12, %v3100_v47, %v1287_v38  ;;  %v585_v35 = vpop.f32.mrf.mxu1  ;;  %v633_v29 = vld [vmem:[#allocation2 + $0x41] ss:$4 sm:$0xff]  ;;  %v621_v38 = vld [vmem:[#allocation2 + $0x40] ss:$4 sm:$0xff] }
 0x14d   : > { %v3375_v24 = vpop.eup %2251  ;;  %v1556_v11 = vsel %vm3369_vm10, %v3124_v14, %v1552_v48  ;;  %v1393_v19 = vmul.f32 %v2733_v0, %v3161_v28  ;;  %v1658_v42 = vmul.f32 %v2736_v3, %v3161_v28  ;;  %2259 = vrcp.f32 %v3337_v30  ;;  %2051 = vmatmul.msk.f32.gmra.mxu2 %vm3949_vm1, %v633_v29  ;;  %2055 = vmatmul.msk.f32.gmra.mxu3 %vm3949_vm1, %v621_v38  ;;  %v623_v29 = vld [vmem:[#allocation2 + $0x60] ss:$4 sm:$0xff] }
 0x14e   : > { %v3387_v56 = vpop.eup %2253  ;;  %v1609_v55 = vmul.f32 %v3375_v24, %v3285_v41  ;;  %v1126_v50 = vmul.f32 %v583_v10, %v2920_v37  ;;  %v1128_v47 = vmul.f32 %v583_v10, %v3161_v28  ;;  %v3397_v14 = vsel %vm3297_vm14, %v3266_v34, %v1024_v4 }
 0x14f   : > { %v1874_v0 = vmul.f32 %v3387_v56, %v3302_v33  ;;  %v3401_v3 = vadd.f32 1.0, %v2248_v58  ;;  %v1130_v21 = vmul.f32 %v583_v10, %v2669_v1  ;;  %v3406_v26 = vsel %vm3310_vm5, %v1295_v18, %v1291_v9 }
 0x150   : > { %v2256_v51 = vpop.eup %2255  ;;  %v3410_v37 = vsel %vm3349_vm15, %v1560_v2, %v1556_v11  ;;  %v912_v28 = vsel %vm3949_vm1, %v861_v31, 0.0  ;;  %v1132_v34 = vmul.f32 %v583_v10, %v2912_v46  ;;  %v1610_v53 = vsub.f32 1.0, %v1609_v55 }
 0x151   : > { %v3414_v20 = vpop.eup %2257  ;;  %v1875_v5 = vsub.f32 1.0, %v1874_v0  ;;  %v3416_v23 = vadd.f32 1.0, %v2250_v62  ;;  %v3419_v1 = vsel %vm3949_vm1, %v1393_v19, 0.0  ;;  %v3422_v7 = vsel %vm3949_vm1, %v1658_v42, 0.0 }
 0x152   : > { %v3425_v43 = vsel %vm3949_vm1, %v1126_v50, 0.0  ;;  %v3428_v59 = vsel %vm3949_vm1, %v1128_v47, 0.0  ;;  %v862_v46 = vmul.f32 %v3158_v39, %v3273_v27  ;;  %v1564_v22 = vmul.f32 %v3414_v20, %v3327_v17 }
 0x153   : > { %v3434_v12 = vadd.f32 1.0, %v2256_v51  ;;  %2261 = vrcp.f32 %v3401_v3  ;;  %v3438_v13 = vsel %vm3949_vm1, %v1130_v21, 0.0  ;;  %v3440_v25 = vpop.eup %2259  ;;  %vm1613_vm6 = vweird.f32 %v3285_v41 }
 0x154   : > { %v1619_v44 = vand.u32 2147483648, %v3285_v41  ;;  %vm1878_vm7 = vweird.f32 %v3302_v33  ;;  %v3446_v39 = vsel %vm3949_vm1, %v1132_v34, 0.0  ;;  %v1611_v45 = vmul.f32 %v3375_v24, %v1610_v53 }
 0x155   : > { %v1876_v60 = vmul.f32 %v3387_v56, %v1875_v5  ;;  %v1884_v15 = vand.u32 2147483648, %v3302_v33  ;;  %2263 = vrcp.f32 %v3416_v23  ;;  %vm1614_vm14 = vweird.f32 %v3375_v24  ;;  %2056 = vmatmul.msk.f32.gmra.mxu3 %vm3949_vm1, %v623_v29 }
 0x156   : > { %v1574_v48 = vand.u32 2147483648, %v3327_v17  ;;  %v1839_v54 = vand.u32 2147483648, %v3337_v30  ;;  %v913_v18 = vsel %vm3949_vm1, %v862_v46, 0.0  ;;  %vm1879_vm2 = vweird.f32 %v3387_v56  ;;  %vm3476_vm4 = vmor %vm1613_vm6, %vm1614_vm14 }
 0x157   : > { %v1565_v10 = vsub.f32 1.0, %v1564_v22  ;;  %v1829_v58 = vmul.f32 %v3440_v25, %v3337_v30  ;;  %2265 = vrcp.f32 %v3434_v12  ;;  %v1617_v57 = vand.u32 2147483647, %v3285_v41  ;;  %vm3488_vm5 = vmor %vm1878_vm7, %vm1879_vm2  ;;  %v2058_v22 = vld [vmem:[%s3940_s4 + $0x48] sm:$0xff] }
 0x158   : > { %v1042_v49 = vand.u32 2147483648, %v3401_v3  ;;  %v1394_v2 = vmul.f32 %v2756_v16, %v3273_v27  ;;  %v586_v62 = vadd.f32 %v3095_v52, %v585_v35  ;;  %v3470_v40 = vadd.f32 %v3375_v24, %v1611_v45  ;;  %v635_v35 = vld [vmem:[#allocation2 + $0x61] ss:$4 sm:$0xff] }
 0x159   : > { %v3467_v4 = vpop.eup %2261  ;;  %v3480_v9 = vor.u32 1.1754944e-38, %v1619_v44  ;;  %v3483_v11 = vadd.f32 %v3387_v56, %v1876_v60  ;;  %v1882_v16 = vand.u32 2147483647, %v3302_v33  ;;  %v3492_v19 = vor.u32 1.1754944e-38, %v1884_v15  ;;  %2052 = vmatmul.msk.f32.gmra.mxu2 %vm3949_vm1, %v635_v35  ;;  %v2059_v35 = vld [vmem:[%s3940_s4 + $0x50] sm:$0xff] }
 0x15a   : > { %v1572_v42 = vand.u32 2147483647, %v3327_v17  ;;  %v1837_v55 = vand.u32 2147483647, %v3337_v30  ;;  %v914_v50 = vadd.f32 %v913_v18, %v912_v28  ;;  %v1566_v0 = vmul.f32 %v3414_v20, %v1565_v10  ;;  %761 = vmatpush.msra.mxu2 %v2059_v35  ;;  %v4026_v33 = vld [vmem:[#allocation9_spill] sm:$0xff] }
 0x15b   : > { %v3496_v47 = vpop.eup %2263  ;;  %v3499_v21 = vor.u32 1.1754944e-38, %v1574_v48  ;;  %v1830_v51 = vsub.f32 1.0, %v1829_v58  ;;  %v3501_v34 = vor.u32 1.1754944e-38, %v1839_v54  ;;  %v1032_v53 = vmul.f32 %v3467_v4, %v3401_v3 }
 0x15c   : > { %v3506_v46 = vor.u32 1.1754944e-38, %v1042_v49  ;;  %v915_v60 = vrot.slane %v914_v50, 4  ;;  %v1445_v15 = vsel %vm3949_vm1, %v1394_v2, 0.0  ;;  %v3522_v38 = vmul.f32 %v3496_v47, %v3416_v23  ;;  %v4019_v2 = vld [vmem:[#allocation12_spill] sm:$0xff]  ;;  %762 = vmatpush.msra.mxu2 %v2058_v22 }
 0x15d   : > { %v3509_v44 = vpop.eup %2265  ;;  %v1446_v54 = vadd.f32 %v1445_v15, %v3419_v1  ;;  %v1659_v18 = vmul.f32 %v2825_v8, %v3273_v27  ;;  %v3531_v10 = vadd.f32 %v3414_v20, %v1566_v0  ;;  %v3534_v58 = vmul.f32 %v3440_v25, %v1830_v51  ;;  %v2067_v0 = vld [vmem:[%s3940_s4 + $0x70] sm:$0xff] }
 0x15e   : > { %v916_v49 = vadd.f32 %v915_v60, %v914_v50  ;;  %v1127_v45 = vmul.f32 %v586_v62, %v4019_v2  ;;  %v1033_v28 = vsub.f32 1.0, %v1032_v53  ;;  %v3539_v1 = vmul.f32 %v3509_v44, %v3434_v12  ;;  %819 = vmatpush.msra.mxu3 %v2067_v0 }
 0x15f   : > { %v1447_v15 = vrot.slane %v1446_v54, 4  ;;  %v1710_v8 = vsel %vm3949_vm1, %v1659_v18, 0.0  ;;  %v1129_v53 = vmul.f32 %v586_v62, %v3273_v27  ;;  %v1131_v60 = vmul.f32 %v586_v62, %v2822_v6 }
 0x160   : > { %v917_v51 = vrot.slane %v916_v49, 2  ;;  %v1711_v50 = vadd.f32 %v1710_v8, %v3422_v7  ;;  %v1063_v29 = vsub.f32 1.0, %v3522_v38  ;;  %v1133_v2 = vmul.f32 %v586_v62, %v3146_v61  ;;  %v2066_v7 = vld [vmem:[%s3940_s4 + $0x68] sm:$0xff] }
 0x161   : > { %v1448_v18 = vadd.f32 %v1447_v15, %v1446_v54  ;;  %v1171_v48 = vsel %vm3949_vm1, %v1127_v45, 0.0  ;;  %v1180_v35 = vsel %vm3949_vm1, %v1129_v53, 0.0  ;;  %820 = vmatpush.msra.mxu3 %v2066_v7  ;;  %v3563_v61 = vmul.f32 %v3467_v4, %v1033_v28  ;;  %v2057_v15 = vld [vmem:[%s3940_s4 + $0x40] sm:$0xff] }
 0x162   : > { %v918_v27 = vadd.f32 %v917_v51, %v916_v49  ;;  %v1712_v8 = vrot.slane %v1711_v50, 4  ;;  %v1172_v6 = vadd.f32 %v1171_v48, %v3425_v43  ;;  %v1181_v45 = vadd.f32 %v1180_v35, %v3428_v59  ;;  %v2065_v43 = vld [vmem:[%s3940_s4 + $0x60] sm:$0xff]  ;;  %763 = vmatpush.msra.mxu2 %v2057_v15 }
 0x163   : > { %v1449_v62 = vrot.slane %v1448_v18, 2  ;;  %v1189_v54 = vsel %vm3949_vm1, %v1131_v60, 0.0  ;;  %v724_v48 = vld [vmem:[#allocation2 + $0x2] ss:$4 sm:$0xff]  ;;  %821 = vmatpush.msra.mxu3 %v2065_v43  ;;  %v782_v51 = vld [vmem:[#allocation2 + $0x3] ss:$4 sm:$0xff]  ;;  %vm1569_vm9 = vweird.f32 %v3414_v20  ;;  %vm1568_vm11 = vweird.f32 %v3327_v17 }
 0x164   : > { %v919_v49 = vrot.slane %v918_v27, 1  ;;  %v1713_v0 = vadd.f32 %v1712_v8, %v1711_v50  ;;  %v1173_v28 = vrot.slane %v1172_v6, 4  ;;  %v1182_v53 = vrot.slane %v1181_v45, 4  ;;  %2061 = vmatmul.msk.f32.vlgmr.msra.gmra.mxu2 %vm3949_vm1, %v724_v48  ;;  %2069 = vmatmul.msk.f32.vlgmr.msra.gmra.mxu3 %vm3949_vm1, %v782_v51 }
 0x165   : > { %v1450_v59 = vadd.f32 %v1449_v62, %v1448_v18  ;;  %v1190_v60 = vadd.f32 %v1189_v54, %v3438_v13  ;;  %v1198_v7 = vsel %vm3949_vm1, %v1133_v2, 0.0  ;;  %v4020_v18 = vld [vmem:[#allocation7_spill] sm:$0xff]  ;;  %v4021_v62 = vld [vmem:[#allocation10_spill] sm:$0xff]  ;;  %vm1834_vm12 = vweird.f32 %v3440_v25 }
 0x166   : > { %v920_v35 = vadd.f32 %v919_v49, %v918_v27  ;;  %v1714_v5 = vrot.slane %v1713_v0, 2  ;;  %v1174_v22 = vadd.f32 %v1173_v28, %v1172_v6  ;;  %v1199_v50 = vadd.f32 %v1198_v7, %v3446_v39 }
 0x167   : > { %v1451_v8 = vrot.slane %v1450_v59, 1  ;;  %v1183_v15 = vadd.f32 %v1182_v53, %v1181_v45  ;;  %v1191_v43 = vrot.slane %v1190_v60, 4  ;;  %v1105_v13 = vsel %vm3947_vm0, %v4021_v62, %v4020_v18  ;;  %v4030_v62 = vld [vmem:[#allocation8_spill] sm:$0xff] }
 0x168   : > { %v2078_v2 = vmul.f32 -1.442695, %v920_v35  ;;  %v1715_v54 = vadd.f32 %v1714_v5, %v1713_v0  ;;  %v1175_v48 = vrot.slane %v1174_v22, 2  ;;  %v1200_v51 = vrot.slane %v1199_v50, 4 }
 0x169   : > { %vm1037_vm8 = vweird.f32 %v3467_v4  ;;  %v1452_v27 = vadd.f32 %v1451_v8, %v1450_v59  ;;  %v1184_v6 = vrot.slane %v1183_v15, 2  ;;  %v1192_v39 = vadd.f32 %v1191_v43, %v1190_v60  ;;  %v726_v8 = vld [vmem:[#allocation2 + $0x22] ss:$4 sm:$0xff]  ;;  %v784_v43 = vld [vmem:[#allocation2 + $0x23] ss:$4 sm:$0xff] }
 0x16a   : > { %v3588_v49 = vsel %vm3948_vm13, %v3397_v14, %v1105_v13  ;;  %vm3592_vm15 = vcmp.eq.f32.partialorder %v1617_v57, 8.507059e+37  ;;  %vm3598_vm10 = vcmp.eq.f32.partialorder %v1882_v16, 8.507059e+37  ;;  %vm1833_vm6 = vweird.f32 %v3337_v30  ;;  %v4027_v16 = vld [vmem:[#allocation11_spill] sm:$0xff] }
 0x16b   : > { %vm1067_vm7 = vweird.f32 %v3496_v47  ;;  %2267 = vpow2.f32 %v2078_v2  ;;  %v1716_v0 = vrot.slane %v1715_v54, 1  ;;  %v1176_v14 = vadd.f32 %v1175_v48, %v1174_v22 }
 0x16c   : > { %v1201_v28 = vadd.f32 %v1200_v51, %v1199_v50  ;;  %vm1036_vm14 = vweird.f32 %v3401_v3  ;;  %v2096_v41 = vmul.f32 -1.442695, %v1452_v27  ;;  %v1185_v57 = vadd.f32 %v1184_v6, %v1183_v15  ;;  %2062 = vmatmul.msk.f32.gmra.mxu2 %vm3949_vm1, %v726_v8  ;;  %2070 = vmatmul.msk.f32.gmra.mxu3 %vm3949_vm1, %v784_v43  ;;  %v786_v8 = vld [vmem:[#allocation2 + $0x43] ss:$4 sm:$0xff] }
 0x16d   : > { %v1193_v59 = vrot.slane %v1192_v39, 2  ;;  %v1371_v53 = vsel %vm3947_vm0, %v4027_v16, %v4026_v33  ;;  %v1717_v60 = vadd.f32 %v1716_v0, %v1715_v54  ;;  %v1177_v7 = vrot.slane %v1176_v14, 1 }
 0x16e   : > { %v1202_v35 = vrot.slane %v1201_v28, 2  ;;  %v3612_v22 = vsel %vm3948_vm13, %v3406_v26, %v1371_v53  ;;  %vm3616_vm2 = vcmp.eq.f32.partialorder %v1572_v42, 8.507059e+37  ;;  %2269 = vpow2.f32 %v2096_v41 }
 0x16f   : > { %v1186_v15 = vrot.slane %v1185_v57, 1  ;;  %v1194_v18 = vadd.f32 %v1193_v59, %v1192_v39  ;;  %v3625_v13 = vsel %vm3948_vm13, %v3410_v37, %v4030_v62  ;;  %v1064_v26 = vmul.f32 %v3496_v47, %v1063_v29  ;;  %vm3645_vm13 = vmor %vm1568_vm11, %vm1569_vm9 }
 0x170   : > { %v2106_v42 = vmul.f32 -1.442695, %v1717_v60  ;;  %v1178_v2 = vadd.f32 %v1177_v7, %v1176_v14  ;;  %v1203_v54 = vadd.f32 %v1202_v35, %v1201_v28  ;;  %v1832_v48 = vadd.f32 %v3440_v25, %v3534_v58  ;;  %vm3675_vm9 = vmor %vm1833_vm6, %vm1834_vm12 }
 0x171   : > { %vm3634_vm0 = vcmp.eq.f32.partialorder %v1837_v55, 8.507059e+37  ;;  %v4033_v27 = vsub.f32 1.0, %v3539_v1  ;;  %v1187_v6 = vadd.f32 %v1186_v15, %v1185_v57  ;;  %v1195_v38 = vrot.slane %v1194_v18, 1  ;;  %v2268_v39 = vpop.eup %2267  ;;  %vm3687_vm11 = vmor %vm1036_vm14, %vm1037_vm8 }
 0x172   : > { %v4036_v55 = vand.u32 2147483647, %v3401_v3  ;;  %v4039_v1 = vand.u32 2147483647, %v3416_v23  ;;  %v1085_v14 = vand.u32 2147483647, %v3434_v12  ;;  %2271 = vpow2.f32 %v2106_v42 }
 0x173   : > { %v1079_v37 = vmul.f32 %v3509_v44, %v4033_v27  ;;  %v1204_v17 = vrot.slane %v1203_v54, 1  ;;  %v2085_v28 = vmul.f32 -1.442695, %v1178_v2  ;;  %v1571_v41 = vsel %vm3645_vm13, %v3414_v20, %v3531_v10 }
 0x174   : > { %vm3651_vm1 = vcmp.eq.f32.partialorder %v4036_v55, 8.507059e+37  ;;  %vm3657_vm3 = vcmp.eq.f32.partialorder %v4039_v1, 8.507059e+37  ;;  %v3666_v57 = vadd.f32 1.0, %v2268_v39  ;;  %v1196_v59 = vadd.f32 %v1195_v38, %v1194_v18  ;;  %v2270_v7 = vpop.eup %2269  ;;  %v730_v38 = vld [vmem:[#allocation2 + $0x62] ss:$4 sm:$0xff] }
 0x175   : > { %v2086_v33 = vmul.f32 -1.442695, %v1187_v6  ;;  %v1035_v16 = vadd.f32 %v3467_v4, %v3563_v61  ;;  %v1065_v53 = vadd.f32 %v3496_v47, %v1064_v26  ;;  %v1205_v60 = vadd.f32 %v1204_v17, %v1203_v54  ;;  %v728_v61 = vld [vmem:[#allocation2 + $0x42] ss:$4 sm:$0xff]  ;;  %v788_v1 = vld [vmem:[#allocation2 + $0x63] ss:$4 sm:$0xff] }
 0x176   : > { %2273 = vpow2.f32 %v2085_v28  ;;  %v1080_v20 = vadd.f32 %v3509_v44, %v1079_v37  ;;  %vm1082_vm13 = vweird.f32 %v3509_v44  ;;  %v1087_v10 = vand.u32 2147483648, %v3434_v12 }
 0x177   : > { %2275 = vrcp.f32 %v3666_v57  ;;  %v3691_v43 = vadd.f32 1.0, %v2270_v7  ;;  %v2087_v15 = vmul.f32 -1.442695, %v1196_v59  ;;  %v2088_v18 = vmul.f32 -1.442695, %v1205_v60 }
 0x178   : > { %2277 = vpow2.f32 %v2086_v33  ;;  %v4046_v62 = vsel %vm3476_vm4, %v3375_v24, %v3470_v40  ;;  %v4047_v3 = vsel %vm3488_vm5, %v3387_v56, %v3483_v11  ;;  %v1836_v31 = vsel %vm3675_vm9, %v3440_v25, %v1832_v48 }
 0x179   : > { %v3701_v26 = vsel %vm3592_vm15, %v3480_v9, %v4046_v62  ;;  %v3711_v42 = vsel %vm3598_vm10, %v3492_v19, %v4047_v3  ;;  %vm4048_vm4 = vweird.f32 %v3416_v23  ;;  %v4051_v40 = vand.u32 2147483648, %v3416_v23  ;;  %v2272_v9 = vpop.eup %2271 }
 0x17a   : > { %vm3720_vm12 = vmor %vm4048_vm4, %vm1067_vm7  ;;  %vm4052_vm5 = vcmask 261120   ;;  %v3731_v25 = vsel %vm3616_vm2, %v3499_v21, %v1571_v41  ;;  %v1039_v11 = vsel %vm3687_vm11, %v3467_v4, %v1035_v16  ;;  %vm4054_vm15 = vweird.f32 %v3434_v12 }
 0x17b   : > { %v1073_v56 = vor.u32 1.1754944e-38, %v4051_v40  ;;  %2063 = vmatmul.msk.f32.gmra.mxu2 %vm4052_vm5, %v728_v61  ;;  %vm4053_vm8 = vmmov %vm4052_vm5  ;;  %v1069_v52 = vsel %vm3720_vm12, %v3496_v47, %v1065_v53  ;;  %2279 = vrcp.f32 %v3691_v43  ;;  %v1055_v4 = vand.u32 2147483647, %v3666_v57 }
 0x17c   : > { %2071 = vmatmul.msk.f32.gmra.mxu3 %vm4053_vm8, %v786_v8  ;;  %vm3743_vm10 = vmor %vm4054_vm15, %vm1082_vm13  ;;  %v3752_v21 = vadd.f32 1.0, %v2272_v9  ;;  %2281 = vpow2.f32 %v2087_v15  ;;  %v2274_v47 = vpop.eup %2273  ;;  %v3757_v12 = vsel %vm3634_vm0, %v3501_v34, %v1836_v31  ;;  %vm1086_vm6 = vcmp.eq.f32.partialorder %v1085_v14, 8.507059e+37 }
 0x17d   : > { %v1084_v19 = vsel %vm3743_vm10, %v3509_v44, %v1080_v20  ;;  %v1088_v45 = vor.u32 1.1754944e-38, %v1087_v10  ;;  %2283 = vpow2.f32 %v2088_v18  ;;  %v2276_v5 = vpop.eup %2275  ;;  %v1044_v50 = vsel %vm3651_vm1, %v3506_v46, %v1039_v11  ;;  %vm4059_vm7 = vmmov %vm4052_vm5 }
 0x17e   : > { %v3764_v44 = vsel %vm3657_vm3, %v1073_v56, %v1069_v52  ;;  %v1057_v2 = vand.u32 2147483648, %v3666_v57  ;;  %2285 = vrcp.f32 %v3752_v21  ;;  %v2278_v54 = vpop.eup %2277  ;;  %v1047_v34 = vmul.f32 %v2276_v5, %v3666_v57  ;;  %vm4060_vm14 = vmmov %vm4052_vm5 }
 0x17f   : > { %v3768_v48 = vsel %vm1086_vm6, %v1088_v45, %v1084_v19  ;;  %v1587_v51 = vand.u32 2147483647, %v3691_v43  ;;  %v3772_v27 = vadd.f32 1.0, %v2274_v47  ;;  %vm1051_vm0 = vweird.f32 %v3666_v57 }
 0x180   : > { %vm3775_vm1 = vcmp.eq.f32.partialorder %v1055_v4, 8.507059e+37  ;;  %v1589_v37 = vand.u32 2147483648, %v3691_v43  ;;  %v3780_v6 = vadd.f32 1.0, %v2278_v54  ;;  %v1048_v29 = vsub.f32 1.0, %v1047_v34 }
 0x181   : > { %v2280_v39 = vpop.eup %2279  ;;  %v1852_v55 = vand.u32 2147483647, %v3752_v21  ;;  %v1854_v58 = vand.u32 2147483648, %v3752_v21  ;;  %2287 = vrcp.f32 %v3772_v27  ;;  %v1058_v14 = vor.u32 1.1754944e-38, %v1057_v2 }
 0x182   : > { %v2282_v0 = vpop.eup %2281  ;;  %v1579_v17 = vmul.f32 %v2280_v39, %v3691_v43  ;;  %vm1583_vm3 = vweird.f32 %v3691_v43  ;;  %2289 = vrcp.f32 %v3780_v6  ;;  %v1049_v41 = vmul.f32 %v2276_v5, %v1048_v29 }
 0x183   : > { %2064 = vmatmul.msk.f32.gmra.mxu2 %vm4059_vm7, %v730_v38  ;;  %v2284_v28 = vpop.eup %2283  ;;  %vm1052_vm2 = vweird.f32 %v2276_v5  ;;  %vm3790_vm9 = vcmp.eq.f32.partialorder %v1587_v51, 8.507059e+37  ;;  %v3794_v33 = vadd.f32 1.0, %v2282_v0  ;;  %v1590_v60 = vor.u32 1.1754944e-38, %v1589_v37 }
 0x184   : > { %2072 = vmatmul.msk.f32.gmra.mxu3 %vm4060_vm14, %v788_v1  ;;  %v2286_v16 = vpop.eup %2285  ;;  %v1580_v53 = vsub.f32 1.0, %v1579_v17  ;;  %vm1848_vm13 = vweird.f32 %v3752_v21  ;;  %v1307_v7 = vand.u32 2147483647, %v3772_v27  ;;  %v1050_v35 = vadd.f32 %v2276_v5, %v1049_v41  ;;  %vm1053_vm4 = vmor %vm1051_vm0, %vm1052_vm2 }
 0x185   : > { %v1844_v20 = vmul.f32 %v2286_v16, %v3752_v21  ;;  %vm3799_vm11 = vcmp.eq.f32.partialorder %v1852_v55, 8.507059e+37  ;;  %v1855_v61 = vor.u32 1.1754944e-38, %v1854_v58  ;;  %vm1584_vm12 = vweird.f32 %v2280_v39 }
 0x186   : > { %v1581_v8 = vmul.f32 %v2280_v39, %v1580_v53  ;;  %vm1303_vm5 = vweird.f32 %v3772_v27  ;;  %2291 = vrcp.f32 %v3794_v33  ;;  %v1054_v15 = vsel %vm1053_vm4, %v2276_v5, %v1050_v35  ;;  %vm1585_vm6 = vmor %vm1583_vm3, %vm1584_vm12 }
 0x187   : > { %v2288_v30 = vpop.eup %2287  ;;  %v1845_v18 = vsub.f32 1.0, %v1844_v20  ;;  %v3807_v62 = vadd.f32 1.0, %v2284_v28  ;;  %v1309_v3 = vand.u32 2147483648, %v3772_v27  ;;  %v1059_v24 = vsel %vm3775_vm1, %v1058_v14, %v1054_v15 }
 0x188   : > { %v2290_v31 = vpop.eup %2289  ;;  %v1582_v40 = vadd.f32 %v2280_v39, %v1581_v8  ;;  %v1299_v57 = vmul.f32 %v2288_v30, %v3772_v27  ;;  %vm3813_vm8 = vcmp.eq.f32.partialorder %v1307_v7, 8.507059e+37  ;;  %vm1318_vm15 = vweird.f32 %v3780_v6 }
 0x189   : > { %vm4067_vm10 = vcmask 1041409   ;;  %v1846_v11 = vmul.f32 %v2286_v16, %v1845_v18  ;;  %vm1849_vm0 = vweird.f32 %v2286_v16  ;;  %v1314_v52 = vmul.f32 %v2290_v31, %v3780_v6 }
 0x18a   : > { %v1108_v9 = vsel %vm4067_vm10, %v1059_v24, %v1044_v50  ;;  %v1586_v23 = vsel %vm1585_vm6, %v2280_v39, %v1582_v40  ;;  %v1300_v19 = vsub.f32 1.0, %v1299_v57  ;;  %v1322_v4 = vand.u32 2147483647, %v3780_v6  ;;  %vm4068_vm1 = vmmov %vm4067_vm10  ;;  %v711_v24 = vpop.f32.mrf.mxu3 }
 0x18b   : > { %v1324_v47 = vand.u32 2147483648, %v3780_v6  ;;  %v1591_v45 = vsel %vm3790_vm9, %v1590_v60, %v1586_v23  ;;  %v1847_v5 = vadd.f32 %v2286_v16, %v1846_v11  ;;  %v1315_v2 = vsub.f32 1.0, %v1314_v52  ;;  %vm1850_vm3 = vmor %vm1848_vm13, %vm1849_vm0 }
 0x18c   : > { %2293 = vrcp.f32 %v3807_v62  ;;  %v2292_v50 = vpop.eup %2291  ;;  %v1638_v43 = vsel %vm4068_vm1, %v1591_v45, %v3731_v25  ;;  %v1301_v54 = vmul.f32 %v2288_v30, %v1300_v19  ;;  %vm1304_vm7 = vweird.f32 %v2288_v30  ;;  %vm4071_vm9 = vmmov %vm4068_vm1 }
 0x18d   : > { %v1310_v34 = vor.u32 1.1754944e-38, %v1309_v3  ;;  %v1851_v51 = vsel %vm1850_vm3, %v2286_v16, %v1847_v5  ;;  %v1316_v46 = vmul.f32 %v2290_v31, %v1315_v2  ;;  %vm1319_vm14 = vweird.f32 %v2290_v31  ;;  %vm1305_vm13 = vmor %vm1303_vm5, %vm1304_vm7 }
 0x18e   : > { %v1329_v37 = vmul.f32 %v2292_v50, %v3794_v33  ;;  %v1856_v38 = vsel %vm3799_vm11, %v1855_v61, %v1851_v51  ;;  %v1302_v39 = vadd.f32 %v2288_v30, %v1301_v54  ;;  %vm3835_vm2 = vcmp.eq.f32.partialorder %v1322_v4, 8.507059e+37  ;;  %vm1320_vm11 = vmor %vm1318_vm15, %vm1319_vm14 }
 0x18f   : > { %v1325_v25 = vor.u32 1.1754944e-38, %v1324_v47  ;;  %v1903_v21 = vsel %vm4071_vm9, %v1856_v38, %v3757_v12  ;;  %v1317_v55 = vadd.f32 %v2290_v31, %v1316_v46  ;;  %v1337_v1 = vand.u32 2147483647, %v3794_v33  ;;  %vm4075_vm6 = vmmov %vm4068_vm1  ;;  %v2166_v47 = vld [vmem:[%s3943_s7] ss:$0 sm:$0xff] }
 0x190   : > { %v1330_v58 = vsub.f32 1.0, %v1329_v37  ;;  %v1306_v0 = vsel %vm1305_vm13, %v2288_v30, %v1302_v39  ;;  %vm1334_vm4 = vweird.f32 %v2292_v50  ;;  %v1339_v14 = vand.u32 2147483648, %v3794_v33 }
 0x191   : > { %vm4072_vm12 = vcmask 1042434   ;;  %v1311_v12 = vsel %vm3813_vm8, %v1310_v34, %v1306_v0  ;;  %v1321_v27 = vsel %vm1320_vm11, %v2290_v31, %v1317_v55  ;;  %vm4073_vm5 = vcmask 1043459   ;;  %v670_v31 = vpop.f32.mrf.mxu2 }
 0x192   : > { %v1109_v17 = vsel %vm4072_vm12, %v3764_v44, %v1108_v9  ;;  %v2294_v28 = vpop.eup %2293  ;;  %v1331_v41 = vmul.f32 %v2292_v50, %v1330_v58  ;;  %v1326_v6 = vsel %vm3835_vm2, %v1325_v25, %v1321_v27  ;;  %vm1333_vm15 = vweird.f32 %v3794_v33  ;;  %vm4074_vm10 = vmmov %vm4072_vm12  ;;  %v714_v57 = vpop.f32.mrf.mxu3 }
 0x193   : > { %v3853_v59 = vsel %vm4073_vm5, %v3768_v48, %v1109_v17  ;;  %v1344_v16 = vmul.f32 %v2294_v28, %v3807_v62  ;;  %v1639_v44 = vsel %vm4074_vm10, %v3357_v32, %v1638_v43  ;;  %v1373_v60 = vsel %vm4075_vm6, %v1326_v6, %v1311_v12  ;;  %vm4076_vm8 = vmmov %vm4073_vm5 }
 0x194   : > { %v1332_v53 = vadd.f32 %v2292_v50, %v1331_v41  ;;  %v3864_v7 = vsel %vm4076_vm8, %v3701_v26, %v1639_v44  ;;  %vm4077_vm0 = vmmov %vm4074_vm10  ;;  %v1340_v35 = vor.u32 1.1754944e-38, %v1339_v14  ;;  %vm1338_vm7 = vcmp.eq.f32.partialorder %v1337_v1, 8.507059e+37 }
 0x195   : > { %v1904_v48 = vsel %vm4077_vm0, %v3362_v63, %v1903_v21  ;;  %vm1335_vm1 = vmor %vm1333_vm15, %vm1334_vm4  ;;  %v1345_v20 = vsub.f32 1.0, %v1344_v16  ;;  %v1354_v32 = vand.u32 2147483648, %v3807_v62  ;;  %vm1349_vm14 = vweird.f32 %v2294_v28 }
 0x196   : > { %vm4078_vm3 = vmmov %vm4073_vm5  ;;  %v1336_v10 = vsel %vm1335_vm1, %v2292_v50, %v1332_v53  ;;  %v1352_v26 = vand.u32 2147483647, %v3807_v62  ;;  %vm1348_vm2 = vweird.f32 %v3807_v62  ;;  %v712_v23 = vadd.f32 %v711_v24, %v670_v31 }
 0x197   : > { %v3871_v33 = vsel %vm4078_vm3, %v3711_v42, %v1904_v48  ;;  %v1341_v61 = vsel %vm1338_vm7, %v1340_v35, %v1336_v10  ;;  %v1346_v8 = vmul.f32 %v2294_v28, %v1345_v20  ;;  %vm1350_vm9 = vmor %vm1348_vm2, %vm1349_vm14  ;;  %v1355_v63 = vor.u32 1.1754944e-38, %v1354_v32 }
 0x198   : > { %vm4079_vm13 = vmmov %vm4077_vm0  ;;  %vm1353_vm11 = vcmp.eq.f32.partialorder %v1352_v26, 8.507059e+37  ;;  %vm4081_vm12 = vcmask 261120   ;;  %vm1115_vm15 = vcmask 257024  }
 0x199   : > { %v1347_v30 = vadd.f32 %v2294_v28, %v1346_v8  ;;  %v1374_v15 = vsel %vm4079_vm13, %v1341_v61, %v1373_v60  ;;  %vm4080_vm4 = vmmov %vm4078_vm3  ;;  %v673_v40 = vpop.f32.mrf.mxu2 }
 0x19a   : > { %v715_v2 = vadd.f32 %v714_v57, %v673_v40  ;;  %vm4082_vm5 = vmmov %vm4081_vm12 }
 0x19b   : > { %v1351_v18 = vsel %vm1350_vm9, %v2294_v28, %v1347_v30  ;;  %vm4083_vm10 = vmmov %vm4082_vm5 }
 0x19c   : > { %v1356_v42 = vsel %vm1353_vm11, %v1355_v63, %v1351_v18  ;;  %vm4084_vm6 = vmmov %vm4082_vm5 }
 0x19d   : > { %v1375_v3 = vsel %vm4080_vm4, %v1356_v42, %v1374_v15 }
 0x1d0   : > { %v676_v56 = vpop.f32.mrf.mxu2  ;;  %v717_v9 = vpop.f32.mrf.mxu3 }
 0x1d1   : > { %v718_v46 = vadd.f32 %v717_v9, %v676_v56 }
 0x1d8   : > { %v720_v52 = vpop.f32.mrf.mxu3 }
 0x1dc   : > { %v679_v11 = vpop.f32.mrf.mxu2 }
 0x1dd   : > { %v721_v58 = vadd.f32 %v720_v52, %v679_v11 }
 0x1e7   : > { %v765_v62 = vpop.f32.mrf.mxu2  ;;  %v823_v19 = vpop.f32.mrf.mxu3 }
 0x1e8   : > { %v777_v4 = vadd.f32 %v765_v62, %v712_v23 }
 0x1ea   : > { %v835_v45 = vadd.f32 %v823_v19, %v777_v4 }
 0x1ec   : > { %v843_v5 = vadd.f32 %v2166_v47, %v835_v45 }
 0x1ee   : > { %847 = vst.msk [vmem:[#allocation3] sm:$0xff] %vm4081_vm12, %v843_v5 }
 0x1ef   : > { %v768_v50 = vpop.f32.mrf.mxu2  ;;  %v826_v43 = vpop.f32.mrf.mxu3 }
 0x1f0   : > { %v778_v54 = vadd.f32 %v768_v50, %v715_v2 }
 0x1f2   : > { %v836_v34 = vadd.f32 %v826_v43, %v778_v54 }
 0x1f4   : > { %v844_v51 = vadd.f32 %v2166_v47, %v836_v34 }
 0x1f6   : > { %848 = vst.msk [vmem:[#allocation3 + $0x8] sm:$0xff] %vm4082_vm5, %v844_v51 }
 0x1fd   : > { %v1091_v21 = vld [vmem:[#allocation3] ss:$4 sm:$0xf]  ;;  %v1359_v55 = vld [vmem:[#allocation3 + $0x1] ss:$4 sm:$0xf] }
 0x1fe   : > { %v771_v37 = vpop.f32.mrf.mxu2  ;;  %v1113_v1 = vmul.f32 %v3588_v49, %v1091_v21  ;;  %v1378_v0 = vmul.f32 %v3612_v22, %v1359_v55  ;;  %v1624_v14 = vld [vmem:[#allocation3 + $0x2] ss:$4 sm:$0xf]  ;;  %v1889_v17 = vld [vmem:[#allocation3 + $0x3] ss:$4 sm:$0xf] }
 0x1ff   : > { %v829_v38 = vpop.f32.mrf.mxu3  ;;  %v779_v39 = vadd.f32 %v771_v37, %v718_v46  ;;  %v1643_v28 = vmul.f32 %v3625_v13, %v1624_v14  ;;  %v1908_v12 = vmul.f32 %v3220_v36, %v1889_v17 }
 0x200   : > { %1116 = vst.msk [vmem:[%s315_s25] sm:$0xf] %vm1115_vm15, %v1113_v1 }
 0x201   : > { %v837_v29 = vadd.f32 %v829_v38, %v779_v39  ;;  %2089 = vst.msk [vmem:[%s315_s25 + $0x4] sm:$0xf] %vm1115_vm15, %v1378_v0 }
 0x202   : > { %2099 = vst.msk [vmem:[%s315_s25 + $0x8] sm:$0xf] %vm1115_vm15, %v1643_v28 }
 0x203   : > { %v845_v25 = vadd.f32 %v2166_v47, %v837_v29  ;;  %2109 = vst.msk [vmem:[%s315_s25 + $0xc] sm:$0xf] %vm1115_vm15, %v1908_v12 }
 0x205   : > { %849 = vst.msk [vmem:[#allocation3 + $0x10] sm:$0xff] %vm4083_vm10, %v845_v25 }
 0x206   : > { %v774_v27 = vpop.f32.mrf.mxu2 }
 0x207   : > { %v780_v41 = vadd.f32 %v774_v27, %v721_v58  ;;  %v832_v6 = vpop.f32.mrf.mxu3 }
 0x209   : > { %v838_v49 = vadd.f32 %v832_v6, %v780_v41 }
 0x20b   : > { %v846_v22 = vadd.f32 %v2166_v47, %v838_v49 }
 0x20d   : > { %850 = vst.msk [vmem:[#allocation3 + $0x18] sm:$0xff] %vm4084_vm6, %v846_v22 }
 0x214   : > { %v1093_v36 = vld [vmem:[#allocation3 + $0x10] ss:$4 sm:$0xf]  ;;  %v1361_v13 = vld [vmem:[#allocation3 + $0x11] ss:$4 sm:$0xf] }
 0x215   : > { %v1114_v16 = vmul.f32 %v3853_v59, %v1093_v36  ;;  %v1379_v44 = vmul.f32 %v1375_v3, %v1361_v13  ;;  %v1626_v53 = vld [vmem:[#allocation3 + $0x12] ss:$4 sm:$0xf]  ;;  %v1891_v60 = vld [vmem:[#allocation3 + $0x13] ss:$4 sm:$0xf] }
 0x216   : > { %v1644_v48 = vmul.f32 %v3864_v7, %v1626_v53  ;;  %v1909_v35 = vmul.f32 %v3871_v33, %v1891_v60 }
 0x217   : > { %1117 = vst.msk [vmem:[%s315_s25 + $0x10] sm:$0xf] %vm1115_vm15, %v1114_v16 }
 0x218   : > { %2090 = vst.msk [vmem:[%s315_s25 + $0x14] sm:$0xf] %vm1115_vm15, %v1379_v44 }
 0x219   : > { %2100 = vst.msk [vmem:[%s315_s25 + $0x18] sm:$0xf] %vm1115_vm15, %v1644_v48 }
 0x21a   : > { %2110 = vst.msk [vmem:[%s315_s25 + $0x1c] sm:$0xf] %vm1115_vm15, %v1909_v35 }
 0x21b   : > { %2324 = shalt.err (!%p2321_p3)
}
 0x21c   : > { %s2361_s23 = smov 64   ;;  %s2362_s25 = smov 4  }
 0x21d   : > { %2123 = dma.vmem_to_hbm [thread:$0]  (%p2446_p5), %s1928_s17, 512, %s1930_s18, %s1914_s9, %s2361_s23, %s2361_s23, %s2362_s25  }
 0x21e PF: > { %p2129_p4 = scmp.ge.s32.totalorder %s2359_s30, 2  ;;  %s1944_s12 = sand.u32 1, %s2347_s27  }
 0x21f   : > { %s1945_s13 = scalar_lea.sflag [#allocation5], %s1944_s12 }
 0x220   : > { %p2126_p7 = pnand %p2129_p4, %p2450_p6 }
 0x222   : > { %p2127_p8 = pneg %p2126_p7 }
 0x224   : > { %2342 = dma.done.wait (%p2127_p8), %s1945_s13, 512  }
 0x225   : > { %2344 = vsyncadd (%p2127_p8), %s1945_s13, 4294966784  ;;  %p18_p9 = scmp.ge.s32.totalorder %s2433_s11, 4   ;;  %s4085_s27 = smov %s2351_s28 }
 0x226   : > { %s4086_s28 = smov %s2355_s29  ;;  %s4087_s29 = smov %s2444_s14 }
 0x227   : > { %s4088_s30 = smov %s2433_s11  ;;  %20 = sbr.rel (!%p18_p9) target bundleno = 3 (0x3), region = 118 }
 0x22c   :  { %1951 = vsyncpa [#allocation5], 1 }
 0x22d   :  { %1953 = vsyncpa [#allocation5 + $0x1], 1 }

</bundles_post_ra>
